<compile_context>
chip_gen: v5e
topology: v5e:2x2
jax: 0.10.0
libtpu: 0.0.40
codegen_flags: <defaults>
</compile_context>

<pallas_src>
import math
import numpy as np
import jax
import jax.numpy as jnp
from jax.experimental import pallas as pl
from jax.experimental.pallas import tpu as pltpu


OUT_LANES = 128  # lane-dense output slab width (unmasked stores)


def _round_up(x, m):
    return ((x + m - 1) // m) * m


# ---------------------------------------------------------------------------
# Pallas kernel factory: both prediction heads, fused, for one tile of tokens.
# ---------------------------------------------------------------------------
def _make_heads_kernel(split_l2, D, n_cls):
    """Fused-head kernel. Output slab layout (per row, OUT_LANES f32 lanes):
         lanes [0, n_cls)       : class logits (no sigmoid)
         lanes [n_cls, n_cls+4) : sigmoid(bbox coords, first 2 += point)
         lanes [n_cls+4, 128)   : zero padding (raw zeros, wrapper slices off)
    """
    box_lo, box_hi = n_cls, n_cls + 4

    def linear(v, w_ref, b):
        # MXU operands in the weight dtype (f32 or bf16); f32 accumulation;
        # bias / ReLU / sigmoid / point-add stay in f32 on the VPU/EUP.
        return jnp.dot(v.astype(w_ref.dtype), w_ref[...],
                       preferred_element_type=jnp.float32) + b

    def finish(raw, pts, out_ref):
        # Per-row point offset on the first two box coordinates via a cheap
        # VPU lane-select (keeps the HBM-side points input narrow: [tm, 2]).
        lane = jax.lax.broadcasted_iota(jnp.int32, raw.shape, 1)
        raw = raw + jnp.where(lane == box_lo, pts[:, 0:1], 0.0)
        raw = raw + jnp.where(lane == box_lo + 1, pts[:, 1:2], 0.0)
        is_box = (lane >= box_lo) & (lane < box_hi)
        out_ref[...] = jnp.where(is_box, jax.nn.sigmoid(raw), raw)

    if split_l2:
        # Realistic D: per-branch layer-2 matmuls (half the MACs of block-diag)
        def kernel(x_ref, pts_ref, w1_ref, b1_ref, w2c_ref, w2r_ref, b2_ref,
                   w3_ref, b3_ref, out_ref):
            h = jnp.maximum(linear(x_ref[...], w1_ref, b1_ref[...]), 0.0)
            b2 = b2_ref[...]
            hc = jnp.maximum(linear(h[:, :D], w2c_ref, b2[:, :D]), 0.0)
            hr = jnp.maximum(linear(h[:, D:], w2r_ref, b2[:, D:]), 0.0)
            w3 = w3_ref[...]
            raw = (jnp.dot(hc.astype(w3.dtype), w3[:D, :],
                           preferred_element_type=jnp.float32)
                   + jnp.dot(hr.astype(w3.dtype), w3[D:, :],
                             preferred_element_type=jnp.float32)
                   + b3_ref[...])
            finish(raw, pts_ref[...], out_ref)
    else:
        # Toy D: fused block-diagonal layer 2 (3 MXU matmuls total).
        def kernel(x_ref, pts_ref, w1_ref, b1_ref, w2_ref, b2_ref,
                   w3_ref, b3_ref, out_ref):
            h = jnp.maximum(linear(x_ref[...], w1_ref, b1_ref[...]), 0.0)
            h = jnp.maximum(linear(h, w2_ref, b2_ref[...]), 0.0)
            raw = linear(h, w3_ref, b3_ref[...])
            finish(raw, pts_ref[...], out_ref)

    return kernel


# ---------------------------------------------------------------------------
# Wrapper-side algebraic fusion of the parameters (exact re-association).
# Call ONCE outside the per-frame forward path and reuse the result.
# ---------------------------------------------------------------------------
def fuse_params(params, *, operand_dtype=jnp.bfloat16):
    (cw1, cb1, cw2, cb2, cw3, cb3,
     rw1, rb1, rw2, rb2, rw3, rb3,
     wc, bc, wb, bb) = params
    D = cw1.shape[0]
    n_cls = wc.shape[1]
    split_l2 = D >= 128     # block-diag layer2 only worth it for toy D

    # layer 1: x @ [cw1 | rw1]
    W1 = jnp.concatenate([cw1, rw1], axis=1)                  # [D, 2D]
    b1 = jnp.concatenate([cb1, rb1], axis=1)                  # [1, 2D]

    # layer 2: split per-branch (realistic D) or block-diagonal (toy D)
    if split_l2:
        W2, W2c, W2r = None, cw2, rw2                         # 2 x [D, D]
    else:
        z = jnp.zeros((D, D), cw2.dtype)
        W2 = jnp.block([[cw2, z], [z, rw2]])                  # [2D, 2D]
        W2c = W2r = None
    b2 = jnp.concatenate([cb2, rb2], axis=1)                  # [1, 2D]

    # layer 3 fused with the embed heads (no nonlinearity in between -> exact),
    # zero-padded to a lane-dense OUT_LANES-wide slab.
    cw3p = cw3 @ wc                                           # [D, n_cls]
    cb3p = cb3 @ wc + bc                                      # [1, n_cls]
    rw3p = rw3 @ wb                                           # [D, 4]
    rb3p = rb3 @ wb + bb                                      # [1, 4]
    W3 = jnp.zeros((2 * D, OUT_LANES), jnp.float32)
    W3 = W3.at[:D, :n_cls].set(cw3p).at[D:, n_cls:n_cls + 4].set(rw3p)
    b3 = jnp.zeros((1, OUT_LANES), jnp.float32)
    b3 = b3.at[:, :n_cls].set(cb3p).at[:, n_cls:n_cls + 4].set(rb3p)

    cast = lambda a: None if a is None else a.astype(operand_dtype)
    return dict(
        D=D, n_cls=n_cls, split_l2=split_l2, operand_dtype=operand_dtype,
        W1=cast(W1), b1=b1.astype(jnp.float32),
        W2=cast(W2), W2c=cast(W2c), W2r=cast(W2r),
        b2=b2.astype(jnp.float32),
        W3=cast(W3), b3=b3.astype(jnp.float32),
    )


# ---------------------------------------------------------------------------
# Tiling / spec helpers
# ---------------------------------------------------------------------------
def _choose_tm(M):
    # Launch/overhead-bound regime: a single grid step.
    if M < 256:
        return _round_up(max(M, 8), 8)
    # Otherwise: >= 2 "parallel" steps (keeps both v7x TensorCores busy) and
    # tiles capped at 1024 rows (measured HBM-roofline sweet spot).
    n_steps = max(2, -(-M // 1024))
    return _round_up(-(-M // n_steps), 8)


def _const_spec(shape, single_buffer):
    index_map = lambda i: (0, 0)
    if single_buffer:
        try:
            # Constant index_map -> double-buffering these is pure VMEM waste.
            return pl.BlockSpec(shape, index_map, pipeline_mode=pl.Buffered(1))
        except Exception:
            pass
    return pl.BlockSpec(shape, index_map)


# ---------------------------------------------------------------------------
# Wrapper
# ---------------------------------------------------------------------------
def sftranst_heads(hs_last, points, fused, *, tm=None):
    """hs_last: [B, N, D], points: [N, 2], fused = fuse_params(params).
    Returns pred_logits [B, N, n_cls], pred_boxes [B, N, 4]."""
    B, N, D = hs_last.shape
    assert D == fused["D"]
    n_cls = fused["n_cls"]
    split_l2 = fused["split_l2"]
    op_dtype = fused["operand_dtype"]
    M = B * N

    if tm is None:
        tm = _choose_tm(M)
    tm = _round_up(min(tm, _round_up(M, 8)), 8)
    M_pad = _round_up(M, tm)

    x = hs_last.reshape(M, D).astype(op_dtype)
    pts = jnp.broadcast_to(points[None], (B, N, 2)).reshape(M, 2)
    pts = pts.astype(jnp.float32)
    if M_pad != M:   # pad rows so the grid tiles evenly (sliced off below)
        x = jnp.pad(x, ((0, M_pad - M), (0, 0)))
        pts = jnp.pad(pts, ((0, M_pad - M), (0, 0)))

    if split_l2:
        weights = [fused["W1"], fused["b1"], fused["W2c"], fused["W2r"],
                   fused["b2"], fused["W3"], fused["b3"]]
    else:
        weights = [fused["W1"], fused["b1"], fused["W2"],
                   fused["b2"], fused["W3"], fused["b3"]]

    kernel = _make_heads_kernel(split_l2, D, n_cls)

    # Rough cost / VMEM accounting (scheduler hint + explicit scoped limit).
    itemsize = np.dtype(op_dtype).itemsize
    w_bytes = sum(int(w.size) * np.dtype(w.dtype).itemsize for w in weights)
    l2_macs = 2 * D * D if split_l2 else 4 * D * D
    macs_per_row = 2 * D * D + l2_macs + 2 * D * OUT_LANES
    cost = pl.CostEstimate(
        flops=2 * M_pad * macs_per_row,
        transcendentals=M_pad * OUT_LANES,
        bytes_accessed=(M_pad * D * itemsize + M_pad * 2 * 4 + w_bytes
                        + M_pad * OUT_LANES * 4))
    tile_bytes = tm * (D * itemsize + 2 * 4 + OUT_LANES * 4)
    vmem_limit = int(min(max(2 * tile_bytes + 2 * w_bytes + (2 << 20), 8 << 20),
                         48 << 20))

    def run(single_buffer_weights):
        row = lambda shape: pl.BlockSpec(shape, lambda i: (i, 0))
        in_specs = ([row((tm, D)), row((tm, 2))]
                    + [_const_spec(tuple(w.shape), single_buffer_weights)
                       for w in weights])
        return pl.pallas_call(
            kernel,
            grid=(M_pad // tm,),
            in_specs=in_specs,
            out_specs=pl.BlockSpec((tm, OUT_LANES), lambda i: (i, 0)),
            out_shape=jax.ShapeDtypeStruct((M_pad, OUT_LANES), jnp.float32),
            compiler_params=pltpu.CompilerParams(
                dimension_semantics=("parallel",),
                vmem_limit_bytes=vmem_limit),
            cost_estimate=cost,
        )(x, pts, *weights)

    try:
        out = run(True)
    except Exception:
        # pl.Buffered(1) pipeline_mode unsupported on this jax version /
        # backend: fall back to default-buffered constant specs (identical
        # semantics, slightly more VMEM).
        out = run(False)

    cls_out = out[:M, :n_cls].reshape(B, N, n_cls)
    box_out = out[:M, n_cls:n_cls + 4].reshape(B, N, 4)
    return cls_out, box_out


# ---------------------------------------------------------------------------
# Deterministic parameter init (shapes implied by the module __init__)
# ---------------------------------------------------------------------------
def init_params(key, hidden_dim, num_classes=1):
    D = hidden_dim
    keys = jax.random.split(key, 16)
    scale = 1.0 / math.sqrt(D)

    def w(k, shape):
        return jax.random.normal(k, shape, jnp.float32) * scale

    cw1, cw2, cw3 = w(keys[0], (D, D)), w(keys[1], (D, D)), w(keys[2], (D, D))
    cb1, cb2, cb3 = (jnp.zeros((1, D), jnp.float32),) * 3
    rw1, rw2, rw3 = w(keys[3], (D, D)), w(keys[4], (D, D)), w(keys[5], (D, D))
    rb1, rb2, rb3 = (jnp.zeros((1, D), jnp.float32),) * 3

    wc = w(keys[6], (D, num_classes + 1))
    bias_value = -math.log((1 - 0.01) / 0.01)
    bc = jnp.full((1, num_classes + 1), bias_value, jnp.float32)
    wb = w(keys[7], (D, 4))
    bb = jnp.zeros((1, 4), jnp.float32)

    return (cw1, cb1, cw2, cb2, cw3, cb3,
            rw1, rb1, rw2, rb2, rw3, rb3,
            wc, bc, wb, bb)


# ---------------------------------------------------------------------------
# Pure-JAX reference (mirrors the PyTorch head computation, UNFUSED)
# ---------------------------------------------------------------------------
def reference_heads(hs_last, points, params):
    (cw1, cb1, cw2, cb2, cw3, cb3,
     rw1, rb1, rw2, rb2, rw3, rb3,
     wc, bc, wb, bb) = params
    x = hs_last
    h = jax.nn.relu(x @ cw1 + cb1)
    h = jax.nn.relu(h @ cw2 + cb2)
    cls_feat = h @ cw3 + cb3
    cls_out = cls_feat @ wc + bc
    g = jax.nn.relu(x @ rw1 + rb1)
    g = jax.nn.relu(g @ rw2 + rb2)
    reg_feat = g @ rw3 + rb3
    coord = reg_feat @ wb + bb
    coord = coord.at[..., :2].add(points[None])
    return cls_out, jax.nn.sigmoid(coord)


if __name__ == "__main__":
    key = jax.random.PRNGKey(0)

    # --- config 1: module-like sizes (d_model=32, search_feature_sz=8) ------
    B, hidden_dim, out_size = 2, 32, 8
    N = out_size * out_size      # number of query tokens
    k_hs, k_pts, k_params, k_rest = jax.random.split(key, 4)

    # synthetic transformer outputs (stand-in for backbone + transformer)
    hs_last = jax.random.normal(k_hs, (B, N, hidden_dim), jnp.float32)
    points = jax.random.uniform(k_pts, (N, 2), jnp.float32)
    params = init_params(k_params, hidden_dim, num_classes=1)
    ref_cls, ref_box = reference_heads(hs_last, points, params)

    # bf16 MXU-operand default (v5e/v6e/v7x MXUs are bf16-native);
    # fuse_params is hoisted: fuse once, reuse across forward calls.
    fused_bf16 = fuse_params(params)
    cls_bf, box_bf = sftranst_heads(hs_last, points, fused_bf16)
    cls_bf, box_bf = jax.block_until_ready((cls_bf, box_bf))
    np.testing.assert_allclose(np.asarray(cls_bf), np.asarray(ref_cls),
                               rtol=5e-2, atol=5e-2)
    np.testing.assert_allclose(np.asarray(box_bf), np.asarray(ref_box),
                               rtol=5e-2, atol=5e-2)

    # f32 operand path (kept for accuracy-critical deployments)
    fused_f32 = fuse_params(params, operand_dtype=jnp.float32)
    cls_f, box_f = sftranst_heads(hs_last, points, fused_f32)
    cls_f, box_f = jax.block_until_ready((cls_f, box_f))
    np.testing.assert_allclose(np.asarray(cls_f), np.asarray(ref_cls),
                               rtol=1e-4, atol=1e-4)
    np.testing.assert_allclose(np.asarray(box_f), np.asarray(ref_box),
                               rtol=1e-4, atol=1e-4)

    # --- config 2: realistic D (split layer-2 path) + ragged M (pad path) ---
    B2, D2, N2 = 2, 128, 50
    k_hs2, k_pts2, k_par2 = jax.random.split(k_rest, 3)
    hs2 = jax.random.normal(k_hs2, (B2, N2, D2), jnp.float32)
    pts2 = jax.random.uniform(k_pts2, (N2, 2), jnp.float32)
    params2 = init_params(k_par2, D2, num_classes=1)
    ref_cls2, ref_box2 = reference_heads(hs2, pts2, params2)
    fused2 = fuse_params(params2, operand_dtype=jnp.float32)
    cls2, box2 = sftranst_heads(hs2, pts2, fused2)
    cls2, box2 = jax.block_until_ready((cls2, box2))
    np.testing.assert_allclose(np.asarray(cls2), np.asarray(ref_cls2),
                               rtol=1e-4, atol=1e-4)
    np.testing.assert_allclose(np.asarray(box2), np.asarray(ref_box2),
                               rtol=1e-4, atol=1e-4)

    out = {"pred_logits": cls_bf, "pred_boxes": box_bf}
    print("KERNEL_OK")
</pallas_src>

<mosaic_0001>
module attributes {stable_mosaic.version = 11 : i64} {
  func.func @kernel(%arg0: i32, %arg1: memref<128x32xbf16, #tpu.memory_space<vmem>>, %arg2: memref<128x2xf32, #tpu.memory_space<vmem>>, %arg3: memref<32x64xbf16, #tpu.memory_space<vmem>>, %arg4: memref<1x64xf32, #tpu.memory_space<vmem>>, %arg5: memref<64x64xbf16, #tpu.memory_space<vmem>>, %arg6: memref<1x64xf32, #tpu.memory_space<vmem>>, %arg7: memref<64x128xbf16, #tpu.memory_space<vmem>>, %arg8: memref<1x128xf32, #tpu.memory_space<vmem>>, %arg9: memref<128x128xf32, #tpu.memory_space<vmem>>) attributes {dimension_semantics = [#tpu.dimension_semantics<parallel>], iteration_bounds = array<i64: 1>, scalar_prefetch = 0 : i64, scratch_operands = 0 : i64, tpu.core_type = #tpu.core_type<tc>, window_params = [{transform_indices = @transform_0, window_bounds = array<i64: 128, 32>}, {transform_indices = @transform_1, window_bounds = array<i64: 128, 2>}, {pipeline_mode = #tpu.pipeline_mode<synchronous>, transform_indices = @transform_2, window_bounds = array<i64: 32, 64>}, {pipeline_mode = #tpu.pipeline_mode<synchronous>, transform_indices = @transform_3, window_bounds = array<i64: 1, 64>}, {pipeline_mode = #tpu.pipeline_mode<synchronous>, transform_indices = @transform_4, window_bounds = array<i64: 64, 64>}, {pipeline_mode = #tpu.pipeline_mode<synchronous>, transform_indices = @transform_5, window_bounds = array<i64: 1, 64>}, {pipeline_mode = #tpu.pipeline_mode<synchronous>, transform_indices = @transform_6, window_bounds = array<i64: 64, 128>}, {pipeline_mode = #tpu.pipeline_mode<synchronous>, transform_indices = @transform_7, window_bounds = array<i64: 1, 128>}, {transform_indices = @transform_8, window_bounds = array<i64: 128, 128>}]} {
    %c0 = arith.constant 0 : index
    %c0_0 = arith.constant 0 : index
    %0 = vector.load %arg1[%c0, %c0_0] : memref<128x32xbf16, #tpu.memory_space<vmem>>, vector<128x32xbf16>
    %c0_1 = arith.constant 0 : index
    %c0_2 = arith.constant 0 : index
    %1 = vector.load %arg4[%c0_1, %c0_2] : memref<1x64xf32, #tpu.memory_space<vmem>>, vector<1x64xf32>
    %c0_3 = arith.constant 0 : index
    %c0_4 = arith.constant 0 : index
    %2 = vector.load %arg3[%c0_3, %c0_4] : memref<32x64xbf16, #tpu.memory_space<vmem>>, vector<32x64xbf16>
    %cst = arith.constant dense<0.000000e+00> : vector<128x64xf32>
    %3 = tpu.matmul %0, %2, %cst {dimension_numbers = #tpu.dot_dimension_numbers<[1], [0], [0], [1], [0, 0, 1, 1], [], []>} : vector<128x32xbf16>, vector<32x64xbf16>, vector<128x64xf32> -> vector<128x64xf32>
    %4 = vector.broadcast %1 : vector<1x64xf32> to vector<128x64xf32>
    %5 = arith.addf %3, %4 : vector<128x64xf32>
    %cst_5 = arith.constant 0.000000e+00 : f32
    %6 = vector.broadcast %cst_5 : f32 to vector<128x64xf32>
    %7 = arith.maximumf %5, %6 : vector<128x64xf32>
    %c0_6 = arith.constant 0 : index
    %c0_7 = arith.constant 0 : index
    %8 = vector.load %arg6[%c0_6, %c0_7] : memref<1x64xf32, #tpu.memory_space<vmem>>, vector<1x64xf32>
    %9 = arith.truncf %7 : vector<128x64xf32> to vector<128x64xbf16>
    %c0_8 = arith.constant 0 : index
    %c0_9 = arith.constant 0 : index
    %10 = vector.load %arg5[%c0_8, %c0_9] : memref<64x64xbf16, #tpu.memory_space<vmem>>, vector<64x64xbf16>
    %cst_10 = arith.constant dense<0.000000e+00> : vector<128x64xf32>
    %11 = tpu.matmul %9, %10, %cst_10 {dimension_numbers = #tpu.dot_dimension_numbers<[1], [0], [0], [1], [0, 0, 1, 1], [], []>} : vector<128x64xbf16>, vector<64x64xbf16>, vector<128x64xf32> -> vector<128x64xf32>
    %12 = vector.broadcast %8 : vector<1x64xf32> to vector<128x64xf32>
    %13 = arith.addf %11, %12 : vector<128x64xf32>
    %cst_11 = arith.constant 0.000000e+00 : f32
    %14 = vector.broadcast %cst_11 : f32 to vector<128x64xf32>
    %15 = arith.maximumf %13, %14 : vector<128x64xf32>
    %c0_12 = arith.constant 0 : index
    %c0_13 = arith.constant 0 : index
    %16 = vector.load %arg8[%c0_12, %c0_13] : memref<1x128xf32, #tpu.memory_space<vmem>>, vector<1x128xf32>
    %17 = arith.truncf %15 : vector<128x64xf32> to vector<128x64xbf16>
    %c0_14 = arith.constant 0 : index
    %c0_15 = arith.constant 0 : index
    %18 = vector.load %arg7[%c0_14, %c0_15] : memref<64x128xbf16, #tpu.memory_space<vmem>>, vector<64x128xbf16>
    %cst_16 = arith.constant dense<0.000000e+00> : vector<128x128xf32>
    %19 = tpu.matmul %17, %18, %cst_16 {dimension_numbers = #tpu.dot_dimension_numbers<[1], [0], [0], [1], [0, 0, 1, 1], [], []>} : vector<128x64xbf16>, vector<64x128xbf16>, vector<128x128xf32> -> vector<128x128xf32>
    %20 = vector.broadcast %16 : vector<1x128xf32> to vector<128x128xf32>
    %21 = arith.addf %19, %20 : vector<128x128xf32>
    %c0_17 = arith.constant 0 : index
    %c0_18 = arith.constant 0 : index
    %22 = vector.load %arg2[%c0_17, %c0_18] : memref<128x2xf32, #tpu.memory_space<vmem>>, vector<128x2xf32>
    %23 = tpu.iota {dimensions = array<i32: 1>} : vector<128x128xi32>
    %c2_i32 = arith.constant 2 : i32
    %24 = vector.broadcast %c2_i32 : i32 to vector<128x128xi32>
    %25 = arith.cmpi eq, %23, %24 : vector<128x128xi32>
    %26 = vector.extract_strided_slice %22 {offsets = [0, 0], sizes = [128, 1], strides = [1, 1]} : vector<128x2xf32> to vector<128x1xf32>
    %cst_19 = arith.constant 0.000000e+00 : f32
    %27 = vector.shape_cast %26 : vector<128x1xf32> to vector<128x1xf32>
    %28 = vector.broadcast %27 : vector<128x1xf32> to vector<128x128xf32>
    %29 = vector.broadcast %cst_19 : f32 to vector<128x128xf32>
    %30 = arith.select %25, %28, %29 : vector<128x128xi1>, vector<128x128xf32>
    %31 = arith.addf %21, %30 : vector<128x128xf32>
    %c3_i32 = arith.constant 3 : i32
    %32 = vector.broadcast %c3_i32 : i32 to vector<128x128xi32>
    %33 = arith.cmpi eq, %23, %32 : vector<128x128xi32>
    %34 = vector.extract_strided_slice %22 {offsets = [0, 1], sizes = [128, 1], strides = [1, 1]} : vector<128x2xf32> to vector<128x1xf32>
    %cst_20 = arith.constant 0.000000e+00 : f32
    %35 = vector.shape_cast %34 : vector<128x1xf32> to vector<128x1xf32>
    %36 = vector.broadcast %35 : vector<128x1xf32> to vector<128x128xf32>
    %37 = vector.broadcast %cst_20 : f32 to vector<128x128xf32>
    %38 = arith.select %33, %36, %37 : vector<128x128xi1>, vector<128x128xf32>
    %39 = arith.addf %31, %38 : vector<128x128xf32>
    %c2_i32_21 = arith.constant 2 : i32
    %40 = vector.broadcast %c2_i32_21 : i32 to vector<128x128xi32>
    %41 = arith.cmpi sge, %23, %40 : vector<128x128xi32>
    %c6_i32 = arith.constant 6 : i32
    %42 = vector.broadcast %c6_i32 : i32 to vector<128x128xi32>
    %43 = arith.cmpi slt, %23, %42 : vector<128x128xi32>
    %44 = arith.andi %41, %43 : vector<128x128xi1>
    %45 = arith.negf %39 : vector<128x128xf32>
    %46 = math.exp %45 : vector<128x128xf32>
    %cst_22 = arith.constant 1.000000e+00 : f32
    %47 = vector.broadcast %cst_22 : f32 to vector<128x128xf32>
    %48 = arith.addf %47, %46 : vector<128x128xf32>
    %49 = arith.divf %47, %48 : vector<128x128xf32>
    %50 = arith.select %44, %49, %39 : vector<128x128xi1>, vector<128x128xf32>
    %c0_23 = arith.constant 0 : index
    %c0_24 = arith.constant 0 : index
    %51 = vector.load %arg9[%c0_23, %c0_24] : memref<128x128xf32, #tpu.memory_space<vmem>>, vector<128x128xf32>
    tpu.vector_store %arg9[%c0_23, %c0_24], %50 {strides = array<i32>} : memref<128x128xf32, #tpu.memory_space<vmem>>, vector<128x128xf32>,
    return
  }
  func.func @transform_0(%arg0: i32) -> (i32, i32) {
    %c0_i32 = arith.constant 0 : i32
    %c0_i32_0 = arith.constant 0 : i32
    return %arg0, %c0_i32 : i32, i32
  }
  func.func @transform_1(%arg0: i32) -> (i32, i32) {
    %c0_i32 = arith.constant 0 : i32
    %c0_i32_0 = arith.constant 0 : i32
    return %arg0, %c0_i32 : i32, i32
  }
  func.func @transform_2(%arg0: i32) -> (i32, i32) {
    %c0_i32 = arith.constant 0 : i32
    %c0_i32_0 = arith.constant 0 : i32
    %c0_i32_1 = arith.constant 0 : i32
    return %c0_i32, %c0_i32_0 : i32, i32
  }
  func.func @transform_3(%arg0: i32) -> (i32, i32) {
    %c0_i32 = arith.constant 0 : i32
    %c0_i32_0 = arith.constant 0 : i32
    %c0_i32_1 = arith.constant 0 : i32
    return %c0_i32, %c0_i32_0 : i32, i32
  }
  func.func @transform_4(%arg0: i32) -> (i32, i32) {
    %c0_i32 = arith.constant 0 : i32
    %c0_i32_0 = arith.constant 0 : i32
    %c0_i32_1 = arith.constant 0 : i32
    return %c0_i32, %c0_i32_0 : i32, i32
  }
  func.func @transform_5(%arg0: i32) -> (i32, i32) {
    %c0_i32 = arith.constant 0 : i32
    %c0_i32_0 = arith.constant 0 : i32
    %c0_i32_1 = arith.constant 0 : i32
    return %c0_i32, %c0_i32_0 : i32, i32
  }
  func.func @transform_6(%arg0: i32) -> (i32, i32) {
    %c0_i32 = arith.constant 0 : i32
    %c0_i32_0 = arith.constant 0 : i32
    %c0_i32_1 = arith.constant 0 : i32
    return %c0_i32, %c0_i32_0 : i32, i32
  }
  func.func @transform_7(%arg0: i32) -> (i32, i32) {
    %c0_i32 = arith.constant 0 : i32
    %c0_i32_0 = arith.constant 0 : i32
    %c0_i32_1 = arith.constant 0 : i32
    return %c0_i32, %c0_i32_0 : i32, i32
  }
  func.func @transform_8(%arg0: i32) -> (i32, i32) {
    %c0_i32 = arith.constant 0 : i32
    %c0_i32_0 = arith.constant 0 : i32
    return %arg0, %c0_i32 : i32, i32
  }
}

module attributes {stable_mosaic.version = 11 : i64} {
  func.func @kernel(%arg0: i32, %arg1: memref<128x32xbf16, #tpu.memory_space<vmem>>, %arg2: memref<128x2xf32, #tpu.memory_space<vmem>>, %arg3: memref<32x64xbf16, #tpu.memory_space<vmem>>, %arg4: memref<1x64xf32, #tpu.memory_space<vmem>>, %arg5: memref<64x64xbf16, #tpu.memory_space<vmem>>, %arg6: memref<1x64xf32, #tpu.memory_space<vmem>>, %arg7: memref<64x128xbf16, #tpu.memory_space<vmem>>, %arg8: memref<1x128xf32, #tpu.memory_space<vmem>>, %arg9: memref<128x128xf32, #tpu.memory_space<vmem>>) attributes {dimension_semantics = [#tpu.dimension_semantics<parallel>], iteration_bounds = array<i64: 1>, scalar_prefetch = 0 : i64, scratch_operands = 0 : i64, tpu.core_type = #tpu.core_type<tc>, window_params = [{transform_indices = @transform_0, window_bounds = array<i64: 128, 32>}, {transform_indices = @transform_1, window_bounds = array<i64: 128, 2>}, {pipeline_mode = #tpu.pipeline_mode<synchronous>, transform_indices = @transform_2, window_bounds = array<i64: 32, 64>}, {pipeline_mode = #tpu.pipeline_mode<synchronous>, transform_indices = @transform_3, window_bounds = array<i64: 1, 64>}, {pipeline_mode = #tpu.pipeline_mode<synchronous>, transform_indices = @transform_4, window_bounds = array<i64: 64, 64>}, {pipeline_mode = #tpu.pipeline_mode<synchronous>, transform_indices = @transform_5, window_bounds = array<i64: 1, 64>}, {pipeline_mode = #tpu.pipeline_mode<synchronous>, transform_indices = @transform_6, window_bounds = array<i64: 64, 128>}, {pipeline_mode = #tpu.pipeline_mode<synchronous>, transform_indices = @transform_7, window_bounds = array<i64: 1, 128>}, {transform_indices = @transform_8, window_bounds = array<i64: 128, 128>}]} {
    %c0 = arith.constant 0 : index
    %c0_0 = arith.constant 0 : index
    %0 = vector.load %arg1[%c0, %c0_0] : memref<128x32xbf16, #tpu.memory_space<vmem>>, vector<128x32xbf16>
    %c0_1 = arith.constant 0 : index
    %c0_2 = arith.constant 0 : index
    %1 = vector.load %arg4[%c0_1, %c0_2] : memref<1x64xf32, #tpu.memory_space<vmem>>, vector<1x64xf32>
    %c0_3 = arith.constant 0 : index
    %c0_4 = arith.constant 0 : index
    %2 = vector.load %arg3[%c0_3, %c0_4] : memref<32x64xbf16, #tpu.memory_space<vmem>>, vector<32x64xbf16>
    %cst = arith.constant dense<0.000000e+00> : vector<128x64xf32>
    %3 = tpu.matmul %0, %2, %cst {dimension_numbers = #tpu.dot_dimension_numbers<[1], [0], [0], [1], [0, 0, 1, 1], [], []>} : vector<128x32xbf16>, vector<32x64xbf16>, vector<128x64xf32> -> vector<128x64xf32>
    %4 = vector.broadcast %1 : vector<1x64xf32> to vector<128x64xf32>
    %5 = arith.addf %3, %4 : vector<128x64xf32>
    %cst_5 = arith.constant 0.000000e+00 : f32
    %6 = vector.broadcast %cst_5 : f32 to vector<128x64xf32>
    %7 = arith.maximumf %5, %6 : vector<128x64xf32>
    %c0_6 = arith.constant 0 : index
    %c0_7 = arith.constant 0 : index
    %8 = vector.load %arg6[%c0_6, %c0_7] : memref<1x64xf32, #tpu.memory_space<vmem>>, vector<1x64xf32>
    %9 = arith.truncf %7 : vector<128x64xf32> to vector<128x64xbf16>
    %c0_8 = arith.constant 0 : index
    %c0_9 = arith.constant 0 : index
    %10 = vector.load %arg5[%c0_8, %c0_9] : memref<64x64xbf16, #tpu.memory_space<vmem>>, vector<64x64xbf16>
    %cst_10 = arith.constant dense<0.000000e+00> : vector<128x64xf32>
    %11 = tpu.matmul %9, %10, %cst_10 {dimension_numbers = #tpu.dot_dimension_numbers<[1], [0], [0], [1], [0, 0, 1, 1], [], []>} : vector<128x64xbf16>, vector<64x64xbf16>, vector<128x64xf32> -> vector<128x64xf32>
    %12 = vector.broadcast %8 : vector<1x64xf32> to vector<128x64xf32>
    %13 = arith.addf %11, %12 : vector<128x64xf32>
    %cst_11 = arith.constant 0.000000e+00 : f32
    %14 = vector.broadcast %cst_11 : f32 to vector<128x64xf32>
    %15 = arith.maximumf %13, %14 : vector<128x64xf32>
    %c0_12 = arith.constant 0 : index
    %c0_13 = arith.constant 0 : index
    %16 = vector.load %arg8[%c0_12, %c0_13] : memref<1x128xf32, #tpu.memory_space<vmem>>, vector<1x128xf32>
    %17 = arith.truncf %15 : vector<128x64xf32> to vector<128x64xbf16>
    %c0_14 = arith.constant 0 : index
    %c0_15 = arith.constant 0 : index
    %18 = vector.load %arg7[%c0_14, %c0_15] : memref<64x128xbf16, #tpu.memory_space<vmem>>, vector<64x128xbf16>
    %cst_16 = arith.constant dense<0.000000e+00> : vector<128x128xf32>
    %19 = tpu.matmul %17, %18, %cst_16 {dimension_numbers = #tpu.dot_dimension_numbers<[1], [0], [0], [1], [0, 0, 1, 1], [], []>} : vector<128x64xbf16>, vector<64x128xbf16>, vector<128x128xf32> -> vector<128x128xf32>
    %20 = vector.broadcast %16 : vector<1x128xf32> to vector<128x128xf32>
    %21 = arith.addf %19, %20 : vector<128x128xf32>
    %c0_17 = arith.constant 0 : index
    %c0_18 = arith.constant 0 : index
    %22 = vector.load %arg2[%c0_17, %c0_18] : memref<128x2xf32, #tpu.memory_space<vmem>>, vector<128x2xf32>
    %23 = tpu.iota {dimensions = array<i32: 1>} : vector<128x128xi32>
    %c2_i32 = arith.constant 2 : i32
    %24 = vector.broadcast %c2_i32 : i32 to vector<128x128xi32>
    %25 = arith.cmpi eq, %23, %24 : vector<128x128xi32>
    %26 = vector.extract_strided_slice %22 {offsets = [0, 0], sizes = [128, 1], strides = [1, 1]} : vector<128x2xf32> to vector<128x1xf32>
    %cst_19 = arith.constant 0.000000e+00 : f32
    %27 = vector.shape_cast %26 : vector<128x1xf32> to vector<128x1xf32>
    %28 = vector.broadcast %27 : vector<128x1xf32> to vector<128x128xf32>
    %29 = vector.broadcast %cst_19 : f32 to vector<128x128xf32>
    %30 = arith.select %25, %28, %29 : vector<128x128xi1>, vector<128x128xf32>
    %31 = arith.addf %21, %30 : vector<128x128xf32>
    %c3_i32 = arith.constant 3 : i32
    %32 = vector.broadcast %c3_i32 : i32 to vector<128x128xi32>
    %33 = arith.cmpi eq, %23, %32 : vector<128x128xi32>
    %34 = vector.extract_strided_slice %22 {offsets = [0, 1], sizes = [128, 1], strides = [1, 1]} : vector<128x2xf32> to vector<128x1xf32>
    %cst_20 = arith.constant 0.000000e+00 : f32
    %35 = vector.shape_cast %34 : vector<128x1xf32> to vector<128x1xf32>
    %36 = vector.broadcast %35 : vector<128x1xf32> to vector<128x128xf32>
    %37 = vector.broadcast %cst_20 : f32 to vector<128x128xf32>
    %38 = arith.select %33, %36, %37 : vector<128x128xi1>, vector<128x128xf32>
    %39 = arith.addf %31, %38 : vector<128x128xf32>
    %c2_i32_21 = arith.constant 2 : i32
    %40 = vector.broadcast %c2_i32_21 : i32 to vector<128x128xi32>
    %41 = arith.cmpi sge, %23, %40 : vector<128x128xi32>
    %c6_i32 = arith.constant 6 : i32
    %42 = vector.broadcast %c6_i32 : i32 to vector<128x128xi32>
    %43 = arith.cmpi slt, %23, %42 : vector<128x128xi32>
    %44 = arith.andi %41, %43 : vector<128x128xi1>
    %45 = arith.negf %39 : vector<128x128xf32>
    %46 = math.exp %45 : vector<128x128xf32>
    %cst_22 = arith.constant 1.000000e+00 : f32
    %47 = vector.broadcast %cst_22 : f32 to vector<128x128xf32>
    %48 = arith.addf %47, %46 : vector<128x128xf32>
    %49 = arith.divf %47, %48 : vector<128x128xf32>
    %50 = arith.select %44, %49, %39 : vector<128x128xi1>, vector<128x128xf32>
    %c0_23 = arith.constant 0 : index
    %c0_24 = arith.constant 0 : index
    %51 = vector.load %arg9[%c0_23, %c0_24] : memref<128x128xf32, #tpu.memory_space<vmem>>, vector<128x128xf32>
    tpu.vector_store %arg9[%c0_23, %c0_24], %50 {strides = array<i32>} : memref<128x128xf32, #tpu.memory_space<vmem>>, vector<128x128xf32>,
    return
  }
  func.func @transform_0(%arg0: i32) -> (i32, i32) {
    %c0_i32 = arith.constant 0 : i32
    %c0_i32_0 = arith.constant 0 : i32
    return %arg0, %c0_i32 : i32, i32
  }
  func.func @transform_1(%arg0: i32) -> (i32, i32) {
    %c0_i32 = arith.constant 0 : i32
    %c0_i32_0 = arith.constant 0 : i32
    return %arg0, %c0_i32 : i32, i32
  }
  func.func @transform_2(%arg0: i32) -> (i32, i32) {
    %c0_i32 = arith.constant 0 : i32
    %c0_i32_0 = arith.constant 0 : i32
    %c0_i32_1 = arith.constant 0 : i32
    return %c0_i32, %c0_i32_0 : i32, i32
  }
  func.func @transform_3(%arg0: i32) -> (i32, i32) {
    %c0_i32 = arith.constant 0 : i32
    %c0_i32_0 = arith.constant 0 : i32
    %c0_i32_1 = arith.constant 0 : i32
    return %c0_i32, %c0_i32_0 : i32, i32
  }
  func.func @transform_4(%arg0: i32) -> (i32, i32) {
    %c0_i32 = arith.constant 0 : i32
    %c0_i32_0 = arith.constant 0 : i32
    %c0_i32_1 = arith.constant 0 : i32
    return %c0_i32, %c0_i32_0 : i32, i32
  }
  func.func @transform_5(%arg0: i32) -> (i32, i32) {
    %c0_i32 = arith.constant 0 : i32
    %c0_i32_0 = arith.constant 0 : i32
    %c0_i32_1 = arith.constant 0 : i32
    return %c0_i32, %c0_i32_0 : i32, i32
  }
  func.func @transform_6(%arg0: i32) -> (i32, i32) {
    %c0_i32 = arith.constant 0 : i32
    %c0_i32_0 = arith.constant 0 : i32
    %c0_i32_1 = arith.constant 0 : i32
    return %c0_i32, %c0_i32_0 : i32, i32
  }
  func.func @transform_7(%arg0: i32) -> (i32, i32) {
    %c0_i32 = arith.constant 0 : i32
    %c0_i32_0 = arith.constant 0 : i32
    %c0_i32_1 = arith.constant 0 : i32
    return %c0_i32, %c0_i32_0 : i32, i32
  }
  func.func @transform_8(%arg0: i32) -> (i32, i32) {
    %c0_i32 = arith.constant 0 : i32
    %c0_i32_0 = arith.constant 0 : i32
    return %arg0, %c0_i32 : i32, i32
  }
}

</mosaic_0001>

<bundles_post_ra>
// kernel: tpu_custom_call.1
= control target key start
LH: loop header
LB: loop body
LE: loop exit
PB: predicated region body
PF: predicated region fallthrough
CT: control target
= control target key end

     0   :  { %s1754_s0 = inlined_call_operand.vmem [shape: bf16[128,32], index: 0, kind: input, shape index: {}]   ;;  %s1755_s1 = inlined_call_operand.vmem [shape: f32[128,2], index: 1, kind: input, shape index: {}]   ;;  %s1756_s2 = inlined_call_operand.vmem [shape: bf16[32,64], index: 2, kind: input, shape index: {}]   ;;  %s1757_s3 = inlined_call_operand.vmem [shape: f32[1,64], index: 3, kind: input, shape index: {}]   ;;  %s1758_s4 = inlined_call_operand.vmem [shape: bf16[64,64], index: 4, kind: input, shape index: {}]   ;;  %s1759_s5 = inlined_call_operand.vmem [shape: f32[1,64], index: 5, kind: input, shape index: {}]   ;;  %s1760_s6 = inlined_call_operand.vmem [shape: bf16[64,128], index: 6, kind: input, shape index: {}]   ;;  %s1761_s7 = inlined_call_operand.vmem [shape: f32[1,128], index: 7, kind: input, shape index: {}]   ;;  %s1762_s8 = inlined_call_operand.hbm [shape: f32[128,128], index: 8, kind: output, shape index: {}]  }
   0x1   :  { %v1154_v0 = vld [vmem:[%s1756_s2 + $0x8] sm:$0xff]  ;;  %v1153_v1 = vld [vmem:[%s1756_s2] sm:$0xff] }
   0x2   :  { %138 = vmatpush.bf16.msra.mxu0 %v1154_v0  ;;  %1163 = vmatpush.bf16.msra.mxu3 %v1154_v0 }
   0x3   :  { %13 = vsyncpa [#allocation3], 0  ;;  %v1145_v2 = vld [vmem:[%s1754_s0] sm:$0xff]  ;;  %vm107_vm0 = vcmask 261120   ;;  %v1146_v3 = vld [vmem:[%s1754_s0 + $0x8] sm:$0xff]  ;;  %vm241_vm1 = vcmask 523264  }
   0x4   :  { %v1147_v4 = vld [vmem:[%s1754_s0 + $0x10] sm:$0xff]  ;;  %v1148_v5 = vld [vmem:[%s1754_s0 + $0x18] sm:$0xff]  ;;  %v1149_v6 = vld [vmem:[%s1754_s0 + $0x20] sm:$0xff]  ;;  %v1277_v59 = vmov 0   ;;  %s1021_s26 = sshll.u32 %s1762_s8, 4  ;;  %s1280_s27 = smov 128   ;;  %s1022_s26 = int_to_ptr.hbm [resolvable:$true] %s1021_s26 }
   0x5   :  { %v1152_v7 = vld [vmem:[%s1754_s0 + $0x38] sm:$0xff]  ;;  %v1150_v8 = vld [vmem:[%s1754_s0 + $0x28] sm:$0xff]  ;;  %v1151_v10 = vld [vmem:[%s1754_s0 + $0x30] sm:$0xff]  ;;  %1179 = vset.pattern.permute.xlu1 %v1277_v59  ;;  %1178 = vset.pattern.permute.xlu0 %v1277_v59  ;;  %s1281_s28 = smov 8  }
   0x6   :  { %139 = vmatpush.bf16.msra.mxu0 %v1153_v1  ;;  %1164 = vmatpush.bf16.msra.mxu3 %v1153_v1  ;;  %v1158_v9 = vld [vmem:[%s1758_s4 + $0x18] sm:$0xff]  ;;  %v1157_v11 = vld [vmem:[%s1758_s4 + $0x10] sm:$0xff]  ;;  %v1156_v12 = vld [vmem:[%s1758_s4 + $0x8] sm:$0xff] }
   0x7   :  { %270 = vmatpush.bf16.msra.mxu1 %v1158_v9  ;;  %v1155_v13 = vld [vmem:[%s1758_s4] sm:$0xff]  ;;  %v1403_v57 = vld [vmem:[%s1755_s1 + $0x10] sm:$0xff]  ;;  %1180 = vset.pattern.permute.xlu2 %v1277_v59  ;;  %v1162_v0 = vld [vmem:[%s1760_s6 + $0x18] sm:$0xff] }
   0x8   :  { %v1380_v15 = vld [vmem:[%s1757_s3] ss:$0 sm:$0xff]  ;;  %479 = vperm.xlu1 %1179, %v1403_v57   ;;  %403 = vmatpush.bf16.msra.mxu2 %v1162_v0 }
   0x9   :  { %1073 = vmatmul.msk.bf16.vlgmr.msra.gmra.mxu0 %vm107_vm0, %v1145_v2  ;;  %1080 = vmatmul.msk.bf16.vlgmr.msra.gmra.mxu3 %vm107_vm0, %v1152_v7 }
   0xa   :  { %1165 = vmatpush.bf16.msrb.mxu3 %v1158_v9 }
   0xb   :  { %271 = vmatpush.bf16.msra.mxu1 %v1157_v11 }
   0xe   :  { %1166 = vmatpush.bf16.msrb.mxu3 %v1157_v11  ;;  %v455_v11 = vld [vmem:[%s1755_s1 + $0x38] sm:$0xff] }
   0xf   :  { %272 = vmatpush.bf16.msra.mxu1 %v1156_v12 }
  0x12   :  { %1167 = vmatpush.bf16.msrb.mxu3 %v1156_v12  ;;  %v449_v12 = vld [vmem:[%s1755_s1 + $0x8] sm:$0xff] }
  0x13   :  { %273 = vmatpush.bf16.msra.mxu1 %v1155_v13 }
  0x16   :  { %1168 = vmatpush.bf16.msrb.mxu3 %v1155_v13  ;;  %v1159_v13 = vld [vmem:[%s1760_s6] sm:$0xff] }
  0x19   :  { %1074 = vmatmul.msk.bf16.gmra.mxu0 %vm107_vm0, %v1146_v3 }
  0x1a   :  { %1169 = vmatpush.bf16.msra.mxu3 %v1162_v0 }
  0x29   :  { %1075 = vmatmul.msk.bf16.gmra.mxu0 %vm107_vm0, %v1147_v4  ;;  %v451_v4 = vld [vmem:[%s1755_s1 + $0x18] sm:$0xff] }
  0x2a   :  { %484 = vperm.xlu1 %1179, %v451_v4  }
  0x32   :  { %504 = vperm.xlu1 %1179, %v455_v11  }
  0x39   :  { %1076 = vmatmul.msk.bf16.gmra.mxu0 %vm107_vm0, %v1148_v5  ;;  %v448_v5 = vld [vmem:[%s1755_s1] sm:$0xff] }
  0x3a   :  { %469 = vperm.xlu0 %1178, %v448_v5  }
  0x42   :  { %474 = vperm.xlu0 %1178, %v449_v12  }
  0x49   :  { %1077 = vmatmul.msk.bf16.gmra.mxu0 %vm107_vm0, %v1149_v6  ;;  %v1161_v6 = vld [vmem:[%s1760_s6 + $0x10] sm:$0xff] }
  0x4a   :  { %404 = vmatpush.bf16.msra.mxu2 %v1161_v6  ;;  %1170 = vmatpush.bf16.msra.mxu3 %v1161_v6 }
  0x59   :  { %1078 = vmatmul.msk.bf16.gmra.mxu0 %vm107_vm0, %v1150_v8  ;;  %v1160_v8 = vld [vmem:[%s1760_s6 + $0x8] sm:$0xff] }
  0x5a   :  { %405 = vmatpush.bf16.msra.mxu2 %v1160_v8  ;;  %1171 = vmatpush.bf16.msra.mxu3 %v1160_v8 }
  0x5e   :  { %406 = vmatpush.bf16.msra.mxu2 %v1159_v13  ;;  %1172 = vmatpush.bf16.msra.mxu3 %v1159_v13 }
  0x69   :  { %1079 = vmatmul.msk.bf16.gmra.mxu0 %vm107_vm0, %v1151_v10 }
  0x7a   :  { %v480_v8 = vpop.permute.xlu1 %479 }
  0x86   :  { %v141_v14 = vpop.f32.mrf.mxu0 }
  0x87   :  { %v142_v16 = vadd.f32 %v1380_v15, %v141_v14 }
  0x89   :  { %v181_v19 = vmax.f32 %v142_v16, 0.0 }
  0x8c   :  { %v176_v62 = vpop.f32.mrf.mxu3 }
  0x8d   :  { %v177_v9 = vadd.f32 %v1380_v15, %v176_v62 }
  0x8e   :  { %v143_v17 = vpop.f32.mrf.mxu0 }
  0x8f   :  { %v144_v18 = vadd.f32 %v1380_v15, %v143_v17  ;;  %v195_v14 = vmax.f32 %v177_v9, 0.0 }
  0x91   :  { %v182_v20 = vmax.f32 %v144_v18, 0.0  ;;  %v1441_v18 = vld [vmem:[%s1755_s1 + $0x30] sm:$0xff] }
  0x92   :  { %499 = vperm.xlu0 %1178, %v1441_v18  }
  0x93   :  { %v198_v21 = vpack.c.bf16 %v182_v20, %v181_v19  ;;  %v452_v19 = vld [vmem:[%s1755_s1 + $0x20] sm:$0xff]  ;;  %v461_v20 = vld [vmem:[%s1755_s1 + $0x68] sm:$0xff] }
  0x94   :  { %v178_v7 = vpop.f32.mrf.mxu3  ;;  %489 = vperm.xlu2 %1180, %v452_v19  }
  0x95   :  { %1097 = vmatmul.msk.bf16.vlgmr.msra.gmra.mxu1 %vm241_vm1, %v198_v21  ;;  %v179_v10 = vadd.f32 %v1380_v15, %v178_v7  ;;  %v1454_v21 = vld [vmem:[%s1755_s1 + $0x48] sm:$0xff] }
  0x96   :  { %v146_v22 = vpop.f32.mrf.mxu0 }
  0x97   :  { %v147_v23 = vadd.f32 %v1380_v15, %v146_v22  ;;  %v196_v16 = vmax.f32 %v179_v10, 0.0 }
  0x99   :  { %v183_v26 = vmax.f32 %v147_v23, 0.0  ;;  %v205_v17 = vpack.c.bf16 %v196_v16, %v195_v14  ;;  %v453_v23 = vld [vmem:[%s1755_s1 + $0x28] sm:$0xff] }
  0x9a   :  { %514 = vperm.xlu0 %1178, %v1454_v21  }
  0x9c   :  { %494 = vperm.xlu2 %1180, %v453_v23  }
  0x9e   :  { %v148_v24 = vpop.f32.mrf.mxu0 }
  0x9f   :  { %v149_v25 = vadd.f32 %v1380_v15, %v148_v24  ;;  %v460_v24 = vld [vmem:[%s1755_s1 + $0x60] sm:$0xff] }
  0xa1   :  { %v184_v27 = vmax.f32 %v149_v25, 0.0  ;;  %v1278_v25 = vmov 1  }
  0xa2   :  { %529 = vperm.xlu0 %1178, %v460_v24  }
  0xa3   :  { %v199_v28 = vpack.c.bf16 %v184_v27, %v183_v26  ;;  %v1466_v26 = vld [vmem:[%s1759_s5] ss:$0 sm:$0xff] }
  0xa5   :  { %1098 = vmatmul.msk.bf16.gmra.mxu1 %vm241_vm1, %v199_v28 }
  0xa6   :  { %v151_v29 = vpop.f32.mrf.mxu0 }
  0xa7   :  { %v152_v30 = vadd.f32 %v1380_v15, %v151_v29 }
  0xa9   :  { %v185_v33 = vmax.f32 %v152_v30, 0.0  ;;  %v456_v30 = vld [vmem:[%s1755_s1 + $0x40] sm:$0xff] }
  0xaa   :  { %509 = vperm.xlu2 %1180, %v456_v30  }
  0xac   :  { %v470_v9 = vpop.permute.xlu0 %469 }
  0xae   :  { %v153_v31 = vpop.f32.mrf.mxu0 }
  0xaf   :  { %v154_v32 = vadd.f32 %v1380_v15, %v153_v31  ;;  %v463_v31 = vld [vmem:[%s1755_s1 + $0x78] sm:$0xff] }
  0xb0   :  { %544 = vperm.xlu0 %1178, %v463_v31  }
  0xb1   :  { %v186_v34 = vmax.f32 %v154_v32, 0.0 }
  0xb3   :  { %v200_v35 = vpack.c.bf16 %v186_v34, %v185_v33 }
  0xb5   :  { %1099 = vmatmul.msk.bf16.gmra.mxu1 %vm241_vm1, %v200_v35 }
  0xb6   :  { %v156_v36 = vpop.f32.mrf.mxu0 }
  0xb7   :  { %v157_v37 = vadd.f32 %v1380_v15, %v156_v36  ;;  %v459_v36 = vld [vmem:[%s1755_s1 + $0x58] sm:$0xff] }
  0xb8   :  { %524 = vperm.xlu2 %1180, %v459_v36   ;;  %1183 = vset.pattern.permute.xlu0 %v1278_v25 }
  0xb9   :  { %v187_v40 = vmax.f32 %v157_v37, 0.0  ;;  %589 = vperm.xlu0 %1183, %v1403_v57  }
  0xbe   :  { %v158_v38 = vpop.f32.mrf.mxu0 }
  0xbf   :  { %v159_v39 = vadd.f32 %v1380_v15, %v158_v38 }
  0xc1   :  { %v188_v41 = vmax.f32 %v159_v39, 0.0  ;;  %609 = vperm.xlu0 %1183, %v455_v11  }
  0xc3   :  { %v201_v42 = vpack.c.bf16 %v188_v41, %v187_v40  ;;  %v462_v40 = vld [vmem:[%s1755_s1 + $0x70] sm:$0xff] }
  0xc4   :  { %539 = vperm.xlu2 %1180, %v462_v40  }
  0xc5   :  { %1100 = vmatmul.msk.bf16.gmra.mxu1 %vm241_vm1, %v201_v42 }
  0xc6   :  { %v161_v43 = vpop.f32.mrf.mxu0 }
  0xc7   :  { %v162_v44 = vadd.f32 %v1380_v15, %v161_v43 }
  0xc9   :  { %v189_v47 = vmax.f32 %v162_v44, 0.0 }
  0xcc   :  { %1182 = vset.pattern.permute.xlu2 %v1278_v25 }
  0xcd   :  { %585 = vperm.xlu2 %1182, %v449_v12   ;;  %v1503_v12 = vpop.permute.xlu1 %484 }
  0xce   :  { %v163_v45 = vpop.f32.mrf.mxu0 }
  0xcf   :  { %v164_v46 = vadd.f32 %v1380_v15, %v163_v45 }
  0xd1   :  { %v190_v48 = vmax.f32 %v164_v46, 0.0 }
  0xd3   :  { %v202_v49 = vpack.c.bf16 %v190_v48, %v189_v47 }
  0xd5   :  { %1101 = vmatmul.msk.bf16.gmra.mxu1 %vm241_vm1, %v202_v49  ;;  %597 = vperm.xlu2 %1182, %v452_v19  }
  0xd6   :  { %v166_v50 = vpop.f32.mrf.mxu0 }
  0xd7   :  { %v167_v51 = vadd.f32 %v1380_v15, %v166_v50 }
  0xd9   :  { %v191_v54 = vmax.f32 %v167_v51, 0.0 }
  0xdd   :  { %605 = vperm.xlu2 %1182, %v1441_v18  }
  0xde   :  { %v168_v52 = vpop.f32.mrf.mxu0 }
  0xdf   :  { %v169_v53 = vadd.f32 %v1380_v15, %v168_v52 }
  0xe1   :  { %v192_v55 = vmax.f32 %v169_v53, 0.0 }
  0xe3   :  { %v203_v56 = vpack.c.bf16 %v192_v55, %v191_v54 }
  0xe5   :  { %1102 = vmatmul.msk.bf16.gmra.mxu1 %vm241_vm1, %v203_v56  ;;  %617 = vperm.xlu2 %1182, %v1454_v21   ;;  %v1509_v21 = vpop.permute.xlu1 %504 }
  0xe6   :  { %v171_v58 = vpop.f32.mrf.mxu0 }
  0xe7   :  { %v172_v60 = vadd.f32 %v1380_v15, %v171_v58 }
  0xe9   :  { %v193_v1 = vmax.f32 %v172_v60, 0.0 }
  0xed   :  { %629 = vperm.xlu2 %1182, %v460_v24  }
  0xee   :  { %v173_v61 = vpop.f32.mrf.mxu0  ;;  %v1501_v11 = vpop.permute.xlu2 %489 }
  0xef   :  { %v174_v63 = vadd.f32 %v1380_v15, %v173_v61  ;;  %v458_v15 = vld [vmem:[%s1755_s1 + $0x50] sm:$0xff] }
  0xf0   :  { %519 = vperm.xlu1 %1179, %v458_v15   ;;  %621 = vperm.xlu0 %1183, %v458_v15  }
  0xf1   :  { %v194_v2 = vmax.f32 %v174_v63, 0.0 }
  0xf3   :  { %v204_v3 = vpack.c.bf16 %v194_v2, %v193_v1 }
  0xf5   :  { %1103 = vmatmul.msk.bf16.vlgmr.msrb.gmra.mxu3 %vm241_vm1, %v204_v3  ;;  %641 = vperm.xlu2 %1182, %v463_v31  }
  0xf6   :  { %v1507_v19 = vpop.permute.xlu2 %494 }
  0xf8   :  { %534 = vperm.xlu1 %1179, %v461_v20   ;;  %633 = vperm.xlu0 %1183, %v461_v20  }
 0x100   :  { %1181 = vset.pattern.permute.xlu1 %v1278_v25 }
 0x101   :  { %581 = vperm.xlu1 %1181, %v448_v5  }
 0x104   :  { %v1514_v24 = vpop.permute.xlu2 %509 }
 0x105   :  { %1104 = vmatmul.msk.bf16.gmra.mxu3 %vm241_vm1, %v205_v17  ;;  %v475_v17 = vpop.permute.xlu0 %474 }
 0x109   :  { %593 = vperm.xlu1 %1181, %v451_v4  }
 0x111   :  { %601 = vperm.xlu1 %1181, %v453_v23   ;;  %v1512_v23 = vpop.permute.xlu0 %499 }
 0x112   :  { %v275_v22 = vpop.f32.mrf.mxu1 }
 0x113   :  { %v276_v27 = vadd.f32 %v1466_v26, %v275_v22 }
 0x115   :  { %v315_v32 = vmax.f32 %v276_v27, 0.0 }
 0x119   :  { %613 = vperm.xlu1 %1181, %v456_v30  }
 0x11a   :  { %v277_v28 = vpop.f32.mrf.mxu1 }
 0x11b   :  { %v278_v29 = vadd.f32 %v1466_v26, %v277_v28 }
 0x11d   :  { %v316_v33 = vmax.f32 %v278_v29, 0.0 }
 0x11f   :  { %v332_v34 = vpack.c.bf16 %v316_v33, %v315_v32  ;;  %v1520_v33 = vpop.permute.xlu0 %514 }
 0x121   :  { %1121 = vmatmul.msk.bf16.vlgmr.msra.gmra.mxu2 %vm241_vm1, %v332_v34  ;;  %625 = vperm.xlu1 %1181, %v459_v36   ;;  %v1523_v34 = vpop.permute.xlu2 %524 }
 0x122   :  { %v280_v35 = vpop.f32.mrf.mxu1 }
 0x123   :  { %v281_v37 = vadd.f32 %v1466_v26, %v280_v35  ;;  %v464_v35 = vlaneseq }
 0x125   :  { %v317_v41 = vmax.f32 %v281_v37, 0.0  ;;  %v1527_v37 = vand.u32 127, %v464_v35 }
 0x127   :  { %vm466_vm2 = vcmp.eq.s32.totalorder %v1527_v37, 2  ;;  %vm579_vm3 = vcmp.eq.s32.totalorder %v1527_v37, 3  ;;  %vm676_vm4 = vcmp.ge.s32.totalorder %v1527_v37, 2  ;;  %vm677_vm5 = vcmp.lt.s32.totalorder %v1527_v37, 6 }
 0x128   :  { %vm1576_vm7 = vmand %vm676_vm4, %vm677_vm5 }
 0x129   :  { %637 = vperm.xlu1 %1181, %v462_v40  }
 0x12a   :  { %v282_v38 = vpop.f32.mrf.mxu1 }
 0x12b   :  { %v283_v39 = vadd.f32 %v1466_v26, %v282_v38  ;;  %v1529_v38 = vpop.permute.xlu0 %529 }
 0x12d   :  { %v318_v42 = vmax.f32 %v283_v39, 0.0  ;;  %v1537_v39 = vpop.permute.xlu2 %539 }
 0x12f   :  { %v333_v43 = vpack.c.bf16 %v318_v42, %v317_v41  ;;  %v547_v41 = vsel %vm466_vm2, %v470_v9, 0.0 }
 0x131   :  { %1122 = vmatmul.msk.bf16.gmra.mxu2 %vm241_vm1, %v333_v43 }
 0x132   :  { %v285_v44 = vpop.f32.mrf.mxu1 }
 0x133   :  { %v286_v45 = vadd.f32 %v1466_v26, %v285_v44 }
 0x135   :  { %v319_v48 = vmax.f32 %v286_v45, 0.0 }
 0x13a   :  { %v287_v46 = vpop.f32.mrf.mxu1 }
 0x13b   :  { %v288_v47 = vadd.f32 %v1466_v26, %v287_v46 }
 0x13d   :  { %v320_v49 = vmax.f32 %v288_v47, 0.0  ;;  %v1547_v47 = vpop.permute.xlu0 %544 }
 0x13f   :  { %v334_v50 = vpack.c.bf16 %v320_v49, %v319_v48  ;;  %v586_v49 = vpop.permute.xlu2 %585 }
 0x141   :  { %1123 = vmatmul.msk.bf16.gmra.mxu2 %vm241_vm1, %v334_v50  ;;  %v548_v50 = vsel %vm466_vm2, %v475_v17, 0.0 }
 0x142   :  { %v290_v51 = vpop.f32.mrf.mxu1 }
 0x143   :  { %v291_v52 = vadd.f32 %v1466_v26, %v290_v51 }
 0x145   :  { %v321_v55 = vmax.f32 %v291_v52, 0.0 }
 0x14a   :  { %v292_v53 = vpop.f32.mrf.mxu1 }
 0x14b   :  { %v293_v54 = vadd.f32 %v1466_v26, %v292_v53  ;;  %v645_v53 = vsel %vm579_vm3, %v586_v49, 0.0 }
 0x14d   :  { %v322_v56 = vmax.f32 %v293_v54, 0.0 }
 0x14f   :  { %v335_v57 = vpack.c.bf16 %v322_v56, %v321_v55 }
 0x151   :  { %1124 = vmatmul.msk.bf16.gmra.mxu2 %vm241_vm1, %v335_v57 }
 0x152   :  { %v295_v58 = vpop.f32.mrf.mxu1 }
 0x153   :  { %v296_v59 = vadd.f32 %v1466_v26, %v295_v58  ;;  %v590_v58 = vpop.permute.xlu0 %589 }
 0x155   :  { %v323_v62 = vmax.f32 %v296_v59, 0.0  ;;  %v549_v59 = vsel %vm466_vm2, %v480_v8, 0.0 }
 0x15a   :  { %v297_v60 = vpop.f32.mrf.mxu1 }
 0x15b   :  { %v298_v61 = vadd.f32 %v1466_v26, %v297_v60 }
 0x15d   :  { %v324_v63 = vmax.f32 %v298_v61, 0.0 }
 0x15f   :  { %v336_v0 = vpack.c.bf16 %v324_v63, %v323_v62  ;;  %v646_v63 = vsel %vm579_vm3, %v590_v58, 0.0 }
 0x161   :  { %1125 = vmatmul.msk.bf16.gmra.mxu2 %vm241_vm1, %v336_v0 }
 0x162   :  { %v300_v1 = vpop.f32.mrf.mxu1  ;;  %v1517_v27 = vpop.permute.xlu1 %519 }
 0x163   :  { %v301_v2 = vadd.f32 %v1466_v26, %v300_v1 }
 0x165   :  { %v325_v5 = vmax.f32 %v301_v2, 0.0 }
 0x16a   :  { %v302_v3 = vpop.f32.mrf.mxu1  ;;  %v1525_v36 = vpop.permute.xlu1 %534 }
 0x16b   :  { %v303_v4 = vadd.f32 %v1466_v26, %v302_v3 }
 0x16d   :  { %v326_v6 = vmax.f32 %v303_v4, 0.0 }
 0x16f   :  { %v337_v7 = vpack.c.bf16 %v326_v6, %v325_v5  ;;  %v550_v6 = vsel %vm466_vm2, %v1503_v12, 0.0 }
 0x171   :  { %1126 = vmatmul.msk.bf16.gmra.mxu2 %vm241_vm1, %v337_v7 }
 0x173   :  { %v582_v40 = vpop.permute.xlu1 %581 }
 0x174   :  { %v644_v44 = vsel %vm579_vm3, %v582_v40, 0.0 }
 0x178   :  { %v305_v10 = vpop.f32.mrf.mxu3 }
 0x179   :  { %v306_v13 = vadd.f32 %v1466_v26, %v305_v10 }
 0x17b   :  { %v327_v15 = vmax.f32 %v306_v13, 0.0  ;;  %v594_v4 = vpop.permute.xlu1 %593 }
 0x17c   :  { %v647_v13 = vsel %vm579_vm3, %v594_v4, 0.0 }
 0x180   :  { %v307_v14 = vpop.f32.mrf.mxu3 }
 0x181   :  { %v308_v16 = vadd.f32 %v1466_v26, %v307_v14 }
 0x183   :  { %v328_v18 = vmax.f32 %v308_v16, 0.0 }
 0x185   :  { %v338_v20 = vpack.c.bf16 %v328_v18, %v327_v15 }
 0x187   :  { %1127 = vmatmul.msk.bf16.vlgmr.msra.gmra.mxu3 %vm241_vm1, %v338_v20 }
 0x188   :  { %v310_v22 = vpop.f32.mrf.mxu3 }
 0x189   :  { %v311_v25 = vadd.f32 %v1466_v26, %v310_v22 }
 0x18b   :  { %v329_v30 = vmax.f32 %v311_v25, 0.0 }
 0x190   :  { %v312_v28 = vpop.f32.mrf.mxu3 }
 0x191   :  { %v313_v29 = vadd.f32 %v1466_v26, %v312_v28  ;;  %v1535_v26 = vld [vmem:[%s1761_s7] ss:$0 sm:$0xff]  ;;  %s1279_s7 = smov [#allocation2]  }
 0x192   :  { %s1019_s23 = sshll.u32 %s1279_s7, 4  ;;  %s1020_s23 = int_to_ptr.vmem [resolvable:$true] %s1019_s23 }
 0x193   :  { %v330_v31 = vmax.f32 %v313_v29, 0.0 }
 0x195   :  { %v339_v32 = vpack.c.bf16 %v330_v31, %v329_v30 }
 0x197   :  { %1128 = vmatmul.msk.bf16.gmra.mxu3 %vm241_vm1, %v339_v32 }
 0x1a4   :  { %v408_v42 = vpop.f32.mrf.mxu2 }
 0x1a5   :  { %v409_v43 = vadd.f32 %v1535_v26, %v408_v42  ;;  %v551_v42 = vsel %vm466_vm2, %v1501_v11, 0.0 }
 0x1a7   :  { %v563_v45 = vadd.f32 %v547_v41, %v409_v43  ;;  %v598_v41 = vpop.permute.xlu2 %597 }
 0x1a9   :  { %v1545_v46 = vadd.f32 %v644_v44, %v563_v45 }
 0x1ab   :  { %v1129_v48 = vmul.f32 -1.442695, %v1545_v46 }
 0x1ac   :  { %v410_v51 = vpop.f32.mrf.mxu2 }
 0x1ad   :  { %1187 = vpow2.f32 %v1129_v48  ;;  %v411_v52 = vadd.f32 %v1535_v26, %v410_v51 }
 0x1af   :  { %v564_v54 = vadd.f32 %v548_v50, %v411_v52  ;;  %v648_v50 = vsel %vm579_vm3, %v598_v41, 0.0 }
 0x1b1   :  { %v1555_v55 = vadd.f32 %v645_v53, %v564_v54 }
 0x1b3   :  { %v1188_v56 = vpop.eup %1187  ;;  %v1130_v57 = vmul.f32 -1.442695, %v1555_v55 }
 0x1b4   :  { %v727_v60 = vadd.f32 1.0, %v1188_v56  ;;  %v413_v61 = vpop.f32.mrf.mxu2 }
 0x1b5   :  { %1189 = vpow2.f32 %v1130_v57  ;;  %v414_v62 = vadd.f32 %v1535_v26, %v413_v61 }
 0x1b6   :  { %1191 = vrcp.f32 %v727_v60  ;;  %v754_v17 = vand.u32 2147483648, %v727_v60  ;;  %v752_v12 = vand.u32 2147483647, %v727_v60  ;;  %vm748_vm8 = vweird.f32 %v727_v60 }
 0x1b7   :  { %v565_v0 = vadd.f32 %v549_v59, %v414_v62 }
 0x1b8   :  { %v755_v30 = vor.u32 1.1754944e-38, %v754_v17  ;;  %vm753_vm10 = vcmp.eq.f32.partialorder %v752_v12, 8.507059e+37 }
 0x1b9   :  { %v1563_v1 = vadd.f32 %v646_v63, %v565_v0  ;;  %v602_v0 = vpop.permute.xlu1 %601 }
 0x1bb   :  { %v1190_v2 = vpop.eup %1189  ;;  %v1131_v3 = vmul.f32 -1.442695, %v1563_v1 }
 0x1bc   :  { %v1192_v5 = vpop.eup %1191  ;;  %v728_v7 = vadd.f32 1.0, %v1190_v2  ;;  %v415_v8 = vpop.f32.mrf.mxu2  ;;  %v552_v2 = vsel %vm466_vm2, %v1507_v19, 0.0 }
 0x1bd   :  { %v744_v9 = vmul.f32 %v1192_v5, %v727_v60  ;;  %1193 = vpow2.f32 %v1131_v3  ;;  %v416_v10 = vadd.f32 %v1535_v26, %v415_v8  ;;  %vm749_vm6 = vweird.f32 %v1192_v5  ;;  %v606_v19 = vpop.permute.xlu2 %605 }
 0x1be   :  { %1195 = vrcp.f32 %v728_v7  ;;  %vm750_vm9 = vmor %vm748_vm8, %vm749_vm6  ;;  %v769_v49 = vand.u32 2147483648, %v728_v7  ;;  %v767_v52 = vand.u32 2147483647, %v728_v7  ;;  %vm763_vm12 = vweird.f32 %v728_v7 }
 0x1bf   :  { %v745_v14 = vsub.f32 1.0, %v744_v9  ;;  %v566_v16 = vadd.f32 %v550_v6, %v416_v10  ;;  %v649_v9 = vsel %vm579_vm3, %v602_v0, 0.0 }
 0x1c0   :  { %vm768_vm14 = vcmp.eq.f32.partialorder %v767_v52, 8.507059e+37 }
 0x1c1   :  { %v746_v15 = vmul.f32 %v1192_v5, %v745_v14  ;;  %v1574_v18 = vadd.f32 %v647_v13, %v566_v16 }
 0x1c3   :  { %v1194_v20 = vpop.eup %1193  ;;  %v747_v25 = vadd.f32 %v1192_v5, %v746_v15  ;;  %v1132_v28 = vmul.f32 -1.442695, %v1574_v18 }
 0x1c4   :  { %v1196_v29 = vpop.eup %1195  ;;  %v729_v31 = vadd.f32 1.0, %v1194_v20  ;;  %v418_v32 = vpop.f32.mrf.mxu2 }
 0x1c5   :  { %v751_v35 = vsel %vm750_vm9, %v1192_v5, %v747_v25  ;;  %v759_v40 = vmul.f32 %v1196_v29, %v728_v7  ;;  %1197 = vpow2.f32 %v1132_v28  ;;  %v419_v48 = vadd.f32 %v1535_v26, %v418_v32 }
 0x1c6   :  { %v756_v43 = vsel %vm753_vm10, %v755_v30, %v751_v35  ;;  %1199 = vrcp.f32 %v729_v31  ;;  %vm764_vm11 = vweird.f32 %v1196_v29  ;;  %v784_v5 = vand.u32 2147483648, %v729_v31 }
 0x1c7   :  { %v983_v44 = vsel %vm1576_vm7, %v756_v43, %v1545_v46  ;;  %v760_v45 = vsub.f32 1.0, %v759_v40  ;;  %v567_v53 = vadd.f32 %v551_v42, %v419_v48  ;;  %vm765_vm13 = vmor %vm763_vm12, %vm764_vm11  ;;  %v770_v46 = vor.u32 1.1754944e-38, %v769_v49  ;;  %v610_v49 = vpop.permute.xlu0 %609 }
 0x1c8   :  { %999 = vst [vmem:[#allocation2] sm:$0xff] %v983_v44  ;;  %v782_v8 = vand.u32 2147483647, %v729_v31  ;;  %vm778_vm0 = vweird.f32 %v729_v31  ;;  %v785_v16 = vor.u32 1.1754944e-38, %v784_v5  ;;  %v650_v32 = vsel %vm579_vm3, %v606_v19, 0.0  ;;  %v614_v5 = vpop.permute.xlu1 %613 }
 0x1c9   :  { %v761_v51 = vmul.f32 %v1196_v29, %v760_v45  ;;  %v1590_v56 = vadd.f32 %v648_v50, %v567_v53 }
 0x1ca   :  { %vm783_vm4 = vcmp.eq.f32.partialorder %v782_v8, 8.507059e+37 }
 0x1cb   :  { %v1198_v54 = vpop.eup %1197  ;;  %v762_v11 = vadd.f32 %v1196_v29, %v761_v51  ;;  %v1133_v62 = vmul.f32 -1.442695, %v1590_v56 }
 0x1cc   :  { %v1200_v57 = vpop.eup %1199  ;;  %v730_v58 = vadd.f32 1.0, %v1198_v54  ;;  %v420_v59 = vpop.f32.mrf.mxu2  ;;  %v554_v54 = vsel %vm466_vm2, %v1509_v21, 0.0 }
 0x1cd   :  { %v766_v60 = vsel %vm765_vm13, %v1196_v29, %v762_v11  ;;  %v774_v61 = vmul.f32 %v1200_v57, %v729_v31  ;;  %v421_v6 = vadd.f32 %v1535_v26, %v420_v59  ;;  %vm779_vm15 = vweird.f32 %v1200_v57 }
 0x1ce   :  { %v771_v63 = vsel %vm768_vm14, %v770_v46, %v766_v60  ;;  %1201 = vrcp.f32 %v730_v58  ;;  %vm780_vm1 = vmor %vm778_vm0, %vm779_vm15  ;;  %v797_v41 = vand.u32 2147483647, %v730_v58  ;;  %v799_v42 = vand.u32 2147483648, %v730_v58 }
 0x1cf   :  { %v984_v3 = vsel %vm1576_vm7, %v771_v63, %v1555_v55  ;;  %v775_v4 = vsub.f32 1.0, %v774_v61  ;;  %1203 = vpow2.f32 %v1133_v62  ;;  %v568_v10 = vadd.f32 %v552_v2, %v421_v6 }
 0x1d0   :  { %1000 = vst [vmem:[#allocation2 + $0x8] sm:$0xff] %v984_v3  ;;  %v553_v55 = vsel %vm466_vm2, %v1512_v23, 0.0  ;;  %vm793_vm6 = vweird.f32 %v730_v58  ;;  %v800_v50 = vor.u32 1.1754944e-38, %v799_v42  ;;  %vm798_vm9 = vcmp.eq.f32.partialorder %v797_v41, 8.507059e+37 }
 0x1d1   :  { %v776_v7 = vmul.f32 %v1200_v57, %v775_v4  ;;  %v1605_v17 = vadd.f32 %v649_v9, %v568_v10  ;;  %v555_v9 = vsel %vm466_vm2, %v1514_v24, 0.0  ;;  %v556_v41 = vsel %vm466_vm2, %v1520_v33, 0.0 }
 0x1d3   :  { %v777_v13 = vadd.f32 %v1200_v57, %v776_v7  ;;  %v1134_v31 = vmul.f32 -1.442695, %v1605_v17 }
 0x1d4   :  { %v1202_v14 = vpop.eup %1201  ;;  %v423_v15 = vpop.f32.mrf.mxu2 }
 0x1d5   :  { %v1204_v12 = vpop.eup %1203  ;;  %v781_v20 = vsel %vm780_vm1, %v1200_v57, %v777_v13  ;;  %v789_v25 = vmul.f32 %v1202_v14, %v730_v58  ;;  %v424_v28 = vadd.f32 %v1535_v26, %v423_v15  ;;  %vm794_vm5 = vweird.f32 %v1202_v14 }
 0x1d6   :  { %v786_v29 = vsel %vm783_vm4, %v785_v16, %v781_v20  ;;  %v731_v30 = vadd.f32 1.0, %v1204_v12  ;;  %vm795_vm8 = vmor %vm793_vm6, %vm794_vm5  ;;  %v651_v57 = vsel %vm579_vm3, %v610_v49, 0.0  ;;  %v652_v13 = vsel %vm579_vm3, %v614_v5, 0.0 }
 0x1d7   :  { %v985_v23 = vsel %vm1576_vm7, %v786_v29, %v1563_v1  ;;  %v790_v35 = vsub.f32 1.0, %v789_v25  ;;  %v569_v40 = vadd.f32 %v553_v55, %v424_v28  ;;  %v557_v5 = vsel %vm466_vm2, %v1517_v27, 0.0 }
 0x1d8   :  { %1001 = vst [vmem:[#allocation2 + $0x10] sm:$0xff] %v985_v23  ;;  %1205 = vrcp.f32 %v731_v30  ;;  %v814_v0 = vand.u32 2147483648, %v731_v30  ;;  %v812_v3 = vand.u32 2147483647, %v731_v30  ;;  %vm808_vm11 = vweird.f32 %v731_v30 }
 0x1d9   :  { %v791_v43 = vmul.f32 %v1202_v14, %v790_v35  ;;  %1207 = vpow2.f32 %v1134_v31  ;;  %v1614_v44 = vadd.f32 %v650_v32, %v569_v40 }
 0x1da   :  { %v815_v10 = vor.u32 1.1754944e-38, %v814_v0  ;;  %vm813_vm13 = vcmp.eq.f32.partialorder %v812_v3, 8.507059e+37 }
 0x1db   :  { %v792_v45 = vadd.f32 %v1202_v14, %v791_v43  ;;  %v1135_v48 = vmul.f32 -1.442695, %v1614_v44 }
 0x1dc   :  { %v425_v51 = vpop.f32.mrf.mxu2 }
 0x1dd   :  { %v796_v1 = vsel %vm795_vm8, %v1202_v14, %v792_v45  ;;  %1209 = vpow2.f32 %v1135_v48  ;;  %v426_v52 = vadd.f32 %v1535_v26, %v425_v51 }
 0x1de   :  { %v1206_v53 = vpop.eup %1205  ;;  %v801_v11 = vsel %vm798_vm9, %v800_v50, %v796_v1 }
 0x1df   :  { %v1208_v46 = vpop.eup %1207  ;;  %v986_v58 = vsel %vm1576_vm7, %v801_v11, %v1574_v18  ;;  %v804_v59 = vmul.f32 %v1206_v53, %v731_v30  ;;  %v570_v60 = vadd.f32 %v554_v54, %v426_v52  ;;  %vm809_vm10 = vweird.f32 %v1206_v53 }
 0x1e0   :  { %1002 = vst [vmem:[#allocation2 + $0x18] sm:$0xff] %v986_v58  ;;  %v732_v61 = vadd.f32 1.0, %v1208_v46  ;;  %vm810_vm12 = vmor %vm808_vm11, %vm809_vm10 }
 0x1e1   :  { %v805_v62 = vsub.f32 1.0, %v804_v59  ;;  %v1626_v63 = vadd.f32 %v651_v57, %v570_v60 }
 0x1e2   :  { %1211 = vrcp.f32 %v732_v61  ;;  %v827_v30 = vand.u32 2147483647, %v732_v61  ;;  %v829_v31 = vand.u32 2147483648, %v732_v61  ;;  %vm823_vm15 = vweird.f32 %v732_v61 }
 0x1e3   :  { %v1210_v2 = vpop.eup %1209  ;;  %v806_v21 = vmul.f32 %v1206_v53, %v805_v62  ;;  %v1136_v4 = vmul.f32 -1.442695, %v1626_v63 }
 0x1e4   :  { %v1629_v6 = vadd.f32 1.0, %v1210_v2  ;;  %v428_v7 = vpop.f32.mrf.mxu2  ;;  %vm828_vm1 = vcmp.eq.f32.partialorder %v827_v30, 8.507059e+37  ;;  %v830_v49 = vor.u32 1.1754944e-38, %v829_v31 }
 0x1e5   :  { %v807_v18 = vadd.f32 %v1206_v53, %v806_v21  ;;  %1213 = vpow2.f32 %v1136_v4  ;;  %v429_v8 = vadd.f32 %v1535_v26, %v428_v7 }
 0x1e6   :  { %1215 = vrcp.f32 %v1629_v6  ;;  %v842_v50 = vand.u32 2147483647, %v1629_v6  ;;  %v844_v51 = vand.u32 2147483648, %v1629_v6  ;;  %vm838_vm5 = vweird.f32 %v1629_v6 }
 0x1e7   :  { %v811_v19 = vsel %vm810_vm12, %v1206_v53, %v807_v18  ;;  %v571_v14 = vadd.f32 %v555_v9, %v429_v8 }
 0x1e8   :  { %v1212_v55 = vpop.eup %1211  ;;  %v816_v16 = vsel %vm813_vm13, %v815_v10, %v811_v19  ;;  %v845_v59 = vor.u32 1.1754944e-38, %v844_v51  ;;  %vm843_vm8 = vcmp.eq.f32.partialorder %v842_v50, 8.507059e+37 }
 0x1e9   :  { %v987_v15 = vsel %vm1576_vm7, %v816_v16, %v1590_v56  ;;  %v819_v12 = vmul.f32 %v1212_v55, %v732_v61  ;;  %v1641_v20 = vadd.f32 %v652_v13, %v571_v14  ;;  %vm824_vm14 = vweird.f32 %v1212_v55  ;;  %v618_v56 = vpop.permute.xlu2 %617 }
 0x1ea   :  { %1003 = vst [vmem:[#allocation2 + $0x20] sm:$0xff] %v987_v15  ;;  %v653_v42 = vsel %vm579_vm3, %v618_v56, 0.0  ;;  %vm825_vm0 = vmor %vm823_vm15, %vm824_vm14 }
 0x1eb   :  { %v1214_v24 = vpop.eup %1213  ;;  %v820_v25 = vsub.f32 1.0, %v819_v12  ;;  %v1137_v28 = vmul.f32 -1.442695, %v1641_v20 }
 0x1ec   :  { %v1216_v29 = vpop.eup %1215  ;;  %v1644_v32 = vadd.f32 1.0, %v1214_v24  ;;  %v430_v23 = vpop.f32.mrf.mxu2  ;;  %v558_v24 = vsel %vm466_vm2, %v1523_v34, 0.0 }
 0x1ed   :  { %v821_v35 = vmul.f32 %v1212_v55, %v820_v25  ;;  %v834_v40 = vmul.f32 %v1216_v29, %v1629_v6  ;;  %1217 = vpow2.f32 %v1137_v28  ;;  %v431_v48 = vadd.f32 %v1535_v26, %v430_v23 }
 0x1ee   :  { %1219 = vrcp.f32 %v1644_v32  ;;  %vm839_vm4 = vweird.f32 %v1216_v29  ;;  %v859_v6 = vand.u32 2147483648, %v1644_v32  ;;  %v857_v8 = vand.u32 2147483647, %v1644_v32 }
 0x1ef   :  { %v822_v43 = vadd.f32 %v1212_v55, %v821_v35  ;;  %v835_v45 = vsub.f32 1.0, %v834_v40  ;;  %v572_v33 = vadd.f32 %v556_v41, %v431_v48  ;;  %vm840_vm6 = vmor %vm838_vm5, %vm839_vm4  ;;  %vm853_vm10 = vweird.f32 %v1644_v32 }
 0x1f0   :  { %v860_v19 = vor.u32 1.1754944e-38, %v859_v6  ;;  %vm858_vm12 = vcmp.eq.f32.partialorder %v857_v8, 8.507059e+37 }
 0x1f1   :  { %v826_v1 = vsel %vm825_vm0, %v1212_v55, %v822_v43  ;;  %v836_v52 = vmul.f32 %v1216_v29, %v835_v45  ;;  %v1660_v46 = vadd.f32 %v653_v42, %v572_v33 }
 0x1f2   :  { %v831_v53 = vsel %vm828_vm1, %v830_v49, %v826_v1 }
 0x1f3   :  { %v1218_v54 = vpop.eup %1217  ;;  %v988_v11 = vsel %vm1576_vm7, %v831_v53, %v1605_v17  ;;  %v837_v57 = vadd.f32 %v1216_v29, %v836_v52  ;;  %v1138_v2 = vmul.f32 -1.442695, %v1660_v46  ;;  %v622_v17 = vpop.permute.xlu0 %621 }
 0x1f4   :  { %v1220_v58 = vpop.eup %1219  ;;  %1004 = vst [vmem:[#allocation2 + $0x28] sm:$0xff] %v988_v11  ;;  %v735_v60 = vadd.f32 1.0, %v1218_v54  ;;  %v433_v61 = vpop.f32.mrf.mxu2  ;;  %v654_v9 = vsel %vm579_vm3, %v622_v17, 0.0 }
 0x1f5   :  { %v841_v62 = vsel %vm840_vm6, %v1216_v29, %v837_v57  ;;  %v849_v0 = vmul.f32 %v1220_v58, %v1644_v32  ;;  %v434_v7 = vadd.f32 %v1535_v26, %v433_v61  ;;  %vm854_vm9 = vweird.f32 %v1220_v58  ;;  %v626_v32 = vpop.permute.xlu1 %625 }
 0x1f6   :  { %v846_v21 = vsel %vm843_vm8, %v845_v59, %v841_v62  ;;  %1221 = vrcp.f32 %v735_v60  ;;  %vm855_vm11 = vmor %vm853_vm10, %vm854_vm9  ;;  %v872_v35 = vand.u32 2147483647, %v735_v60  ;;  %v874_v40 = vand.u32 2147483648, %v735_v60 }
 0x1f7   :  { %v989_v3 = vsel %vm1576_vm7, %v846_v21, %v1614_v44  ;;  %v850_v4 = vsub.f32 1.0, %v849_v0  ;;  %1223 = vpow2.f32 %v1138_v2  ;;  %v573_v10 = vadd.f32 %v557_v5, %v434_v7 }
 0x1f8   :  { %1005 = vst [vmem:[#allocation2 + $0x30] sm:$0xff] %v989_v3  ;;  %v655_v56 = vsel %vm579_vm3, %v626_v32, 0.0  ;;  %vm868_vm14 = vweird.f32 %v735_v60  ;;  %vm873_vm0 = vcmp.eq.f32.partialorder %v872_v35, 8.507059e+37 }
 0x1f9   :  { %v851_v18 = vmul.f32 %v1220_v58, %v850_v4  ;;  %v1676_v27 = vadd.f32 %v654_v9, %v573_v10 }
 0x1fb   :  { %v852_v44 = vadd.f32 %v1220_v58, %v851_v18  ;;  %v1139_v29 = vmul.f32 -1.442695, %v1676_v27  ;;  %v634_v9 = vpop.permute.xlu0 %633 }
 0x1fc   :  { %v1222_v13 = vpop.eup %1221  ;;  %v435_v14 = vpop.f32.mrf.mxu2 }
 0x1fd   :  { %v1224_v55 = vpop.eup %1223  ;;  %v856_v16 = vsel %vm855_vm11, %v1220_v58, %v852_v44  ;;  %v864_v15 = vmul.f32 %v1222_v13, %v735_v60  ;;  %v436_v12 = vadd.f32 %v1535_v26, %v435_v14  ;;  %vm869_vm13 = vweird.f32 %v1222_v13 }
 0x1fe   :  { %v861_v25 = vsel %vm858_vm12, %v860_v19, %v856_v16  ;;  %v736_v28 = vadd.f32 1.0, %v1224_v55  ;;  %vm870_vm15 = vmor %vm868_vm14, %vm869_vm13  ;;  %v559_v60 = vsel %vm466_vm2, %v1529_v38, 0.0 }
 0x1ff   :  { %v990_v30 = vsel %vm1576_vm7, %v861_v25, %v1626_v63  ;;  %v865_v31 = vsub.f32 1.0, %v864_v15  ;;  %v574_v23 = vadd.f32 %v558_v24, %v436_v12  ;;  %v875_v63 = vor.u32 1.1754944e-38, %v874_v40 }
 0x200   :  { %1006 = vst [vmem:[#allocation2 + $0x38] sm:$0xff] %v990_v30  ;;  %1225 = vrcp.f32 %v736_v28  ;;  %v889_v53 = vand.u32 2147483648, %v736_v28  ;;  %v887_v58 = vand.u32 2147483647, %v736_v28  ;;  %vm883_vm4 = vweird.f32 %v736_v28 }
 0x201   :  { %v866_v41 = vmul.f32 %v1222_v13, %v865_v31  ;;  %1227 = vpow2.f32 %v1139_v29  ;;  %v1688_v34 = vadd.f32 %v655_v56, %v574_v23  ;;  %v657_v15 = vsel %vm579_vm3, %v634_v9, 0.0 }
 0x202   :  { %v890_v2 = vor.u32 1.1754944e-38, %v889_v53  ;;  %vm888_vm6 = vcmp.eq.f32.partialorder %v887_v58, 8.507059e+37 }
 0x203   :  { %v867_v42 = vadd.f32 %v1222_v13, %v866_v41  ;;  %v1140_v43 = vmul.f32 -1.442695, %v1688_v34 }
 0x205   :  { %v871_v45 = vsel %vm870_vm15, %v1222_v13, %v867_v42  ;;  %1229 = vpow2.f32 %v1140_v43  ;;  %v560_v13 = vsel %vm466_vm2, %v1525_v36, 0.0  ;;  %v638_v43 = vpop.permute.xlu1 %637 }
 0x206   :  { %v1226_v48 = vpop.eup %1225  ;;  %v876_v49 = vsel %vm873_vm0, %v875_v63, %v871_v45  ;;  %v561_v45 = vsel %vm466_vm2, %v1537_v39, 0.0 }
 0x207   :  { %v1228_v50 = vpop.eup %1227  ;;  %v991_v51 = vsel %vm1576_vm7, %v876_v49, %v1641_v20  ;;  %v879_v1 = vmul.f32 %v1226_v48, %v736_v28  ;;  %vm884_vm1 = vweird.f32 %v1226_v48  ;;  %v630_v20 = vpop.permute.xlu2 %629 }
 0x208   :  { %1007 = vst [vmem:[#allocation2 + $0x40] sm:$0xff] %v991_v51  ;;  %v737_v52 = vadd.f32 1.0, %v1228_v50  ;;  %vm885_vm5 = vmor %vm883_vm4, %vm884_vm1  ;;  %v656_v21 = vsel %vm579_vm3, %v630_v20, 0.0 }
 0x209   :  { %v880_v33 = vsub.f32 1.0, %v879_v1 }
 0x20a   :  { %1231 = vrcp.f32 %v737_v52  ;;  %v438_v54 = vpop.f32.mrf.mxu3  ;;  %v902_v19 = vand.u32 2147483647, %v737_v52  ;;  %v904_v14 = vand.u32 2147483648, %v737_v52  ;;  %vm898_vm9 = vweird.f32 %v737_v52 }
 0x20b   :  { %v1230_v11 = vpop.eup %1229  ;;  %v881_v57 = vmul.f32 %v1226_v48, %v880_v33  ;;  %v439_v59 = vadd.f32 %v1535_v26, %v438_v54 }
 0x20c   :  { %v738_v61 = vadd.f32 1.0, %v1230_v11  ;;  %vm903_vm11 = vcmp.eq.f32.partialorder %v902_v19, 8.507059e+37  ;;  %v905_v28 = vor.u32 1.1754944e-38, %v904_v14 }
 0x20d   :  { %v882_v62 = vadd.f32 %v1226_v48, %v881_v57  ;;  %v575_v0 = vadd.f32 %v559_v60, %v439_v59  ;;  %v562_v60 = vsel %vm466_vm2, %v1547_v47, 0.0 }
 0x20e   :  { %1233 = vrcp.f32 %v738_v61  ;;  %v917_v29 = vand.u32 2147483647, %v738_v61  ;;  %v919_v30 = vand.u32 2147483648, %v738_v61  ;;  %vm913_vm13 = vweird.f32 %v738_v61 }
 0x20f   :  { %v886_v17 = vsel %vm885_vm5, %v1226_v48, %v882_v62  ;;  %v1700_v3 = vadd.f32 %v656_v21, %v575_v0  ;;  %v642_v57 = vpop.permute.xlu2 %641 }
 0x210   :  { %v1232_v4 = vpop.eup %1231  ;;  %v891_v5 = vsel %vm888_vm6, %v890_v2, %v886_v17  ;;  %v920_v48 = vor.u32 1.1754944e-38, %v919_v30  ;;  %vm918_vm15 = vcmp.eq.f32.partialorder %v917_v29, 8.507059e+37  ;;  %v659_v62 = vsel %vm579_vm3, %v642_v57, 0.0 }
 0x211   :  { %v992_v38 = vsel %vm1576_vm7, %v891_v5, %v1660_v46  ;;  %v894_v6 = vmul.f32 %v1232_v4, %v737_v52  ;;  %v1141_v7 = vmul.f32 -1.442695, %v1700_v3  ;;  %vm899_vm8 = vweird.f32 %v1232_v4 }
 0x212   :  { %1008 = vst [vmem:[#allocation2 + $0x48] sm:$0xff] %v992_v38  ;;  %v440_v18 = vpop.f32.mrf.mxu3  ;;  %vm900_vm10 = vmor %vm898_vm9, %vm899_vm8 }
 0x213   :  { %v895_v8 = vsub.f32 1.0, %v894_v6  ;;  %1235 = vpow2.f32 %v1141_v7  ;;  %v441_v10 = vadd.f32 %v1535_v26, %v440_v18 }
 0x214   :  { %v1234_v44 = vpop.eup %1233 }
 0x215   :  { %v896_v55 = vmul.f32 %v1232_v4, %v895_v8  ;;  %v909_v46 = vmul.f32 %v1234_v44, %v738_v61  ;;  %v576_v16 = vadd.f32 %v560_v13, %v441_v10  ;;  %vm914_vm12 = vweird.f32 %v1234_v44 }
 0x216   :  { %vm915_vm14 = vmor %vm913_vm13, %vm914_vm12 }
 0x217   :  { %v897_v12 = vadd.f32 %v1232_v4, %v896_v55  ;;  %v910_v24 = vsub.f32 1.0, %v909_v46  ;;  %v1712_v25 = vadd.f32 %v657_v15, %v576_v16 }
 0x219   :  { %v1236_v36 = vpop.eup %1235  ;;  %v901_v31 = vsel %vm900_vm10, %v1232_v4, %v897_v12  ;;  %v911_v32 = vmul.f32 %v1234_v44, %v910_v24  ;;  %v1142_v23 = vmul.f32 -1.442695, %v1712_v25 }
 0x21a   :  { %v906_v35 = vsel %vm903_vm11, %v905_v28, %v901_v31  ;;  %v739_v40 = vadd.f32 1.0, %v1236_v36  ;;  %v443_v56 = vpop.f32.mrf.mxu3 }
 0x21b   :  { %v993_v41 = vsel %vm1576_vm7, %v906_v35, %v1676_v27  ;;  %v912_v42 = vadd.f32 %v1234_v44, %v911_v32  ;;  %1237 = vpow2.f32 %v1142_v23  ;;  %v444_v63 = vadd.f32 %v1535_v26, %v443_v56 }
 0x21c   :  { %1009 = vst [vmem:[#allocation2 + $0x50] sm:$0xff] %v993_v41  ;;  %1239 = vrcp.f32 %v739_v40  ;;  %v658_v27 = vsel %vm579_vm3, %v638_v43, 0.0  ;;  %v934_v20 = vand.u32 2147483648, %v739_v40  ;;  %v932_v2 = vand.u32 2147483647, %v739_v40 }
 0x21d   :  { %v916_v49 = vsel %vm915_vm14, %v1234_v44, %v912_v42  ;;  %v577_v50 = vadd.f32 %v561_v45, %v444_v63  ;;  %vm928_vm1 = vweird.f32 %v739_v40 }
 0x21e   :  { %v921_v51 = vsel %vm918_vm15, %v920_v48, %v916_v49  ;;  %v935_v47 = vor.u32 1.1754944e-38, %v934_v20  ;;  %vm933_vm2 = vcmp.eq.f32.partialorder %v932_v2, 8.507059e+37 }
 0x21f   :  { %v994_v1 = vsel %vm1576_vm7, %v921_v51, %v1688_v34  ;;  %v1727_v52 = vadd.f32 %v658_v27, %v577_v50 }
 0x220   :  { %1010 = vst [vmem:[#allocation2 + $0x58] sm:$0xff] %v994_v1 }
 0x221   :  { %v1238_v33 = vpop.eup %1237  ;;  %v1143_v39 = vmul.f32 -1.442695, %v1727_v52 }
 0x222   :  { %v1240_v53 = vpop.eup %1239  ;;  %v740_v54 = vadd.f32 1.0, %v1238_v33  ;;  %v445_v11 = vpop.f32.mrf.mxu3 }
 0x223   :  { %v924_v58 = vmul.f32 %v1240_v53, %v739_v40  ;;  %1241 = vpow2.f32 %v1143_v39  ;;  %v446_v59 = vadd.f32 %v1535_v26, %v445_v11  ;;  %vm929_vm0 = vweird.f32 %v1240_v53 }
 0x224   :  { %1243 = vrcp.f32 %v740_v54  ;;  %vm930_vm4 = vmor %vm928_vm1, %vm929_vm0  ;;  %v949_v9 = vand.u32 2147483648, %v740_v54  ;;  %v947_v44 = vand.u32 2147483647, %v740_v54  ;;  %vm943_vm5 = vweird.f32 %v740_v54 }
 0x225   :  { %v925_v34 = vsub.f32 1.0, %v924_v58  ;;  %v578_v61 = vadd.f32 %v562_v60, %v446_v59 }
 0x226   :  { %v950_v55 = vor.u32 1.1754944e-38, %v949_v9  ;;  %vm948_vm8 = vcmp.eq.f32.partialorder %v947_v44, 8.507059e+37 }
 0x227   :  { %v926_v0 = vmul.f32 %v1240_v53, %v925_v34  ;;  %v1736_v21 = vadd.f32 %v659_v62, %v578_v61 }
 0x229   :  { %v1242_v17 = vpop.eup %1241  ;;  %v927_v4 = vadd.f32 %v1240_v53, %v926_v0  ;;  %v1144_v26 = vmul.f32 -1.442695, %v1736_v21 }
 0x22a   :  { %v1244_v5 = vpop.eup %1243  ;;  %v741_v38 = vadd.f32 1.0, %v1242_v17 }
 0x22b   :  { %v931_v6 = vsel %vm930_vm4, %v1240_v53, %v927_v4  ;;  %v939_v7 = vmul.f32 %v1244_v5, %v740_v54  ;;  %1245 = vpow2.f32 %v1144_v26  ;;  %vm944_vm3 = vweird.f32 %v1244_v5 }
 0x22c   :  { %v936_v37 = vsel %vm933_vm2, %v935_v47, %v931_v6  ;;  %1247 = vrcp.f32 %v741_v38  ;;  %vm945_vm6 = vmor %vm943_vm5, %vm944_vm3  ;;  %v964_v28 = vand.u32 2147483648, %v741_v38  ;;  %v962_v30 = vand.u32 2147483647, %v741_v38 }
 0x22d   :  { %v995_v18 = vsel %vm1576_vm7, %v936_v37, %v1700_v3  ;;  %v940_v8 = vsub.f32 1.0, %v939_v7  ;;  %vm958_vm10 = vweird.f32 %v741_v38 }
 0x22e   :  { %1011 = vst [vmem:[#allocation2 + $0x60] sm:$0xff] %v995_v18  ;;  %v965_v32 = vor.u32 1.1754944e-38, %v964_v28  ;;  %vm963_vm12 = vcmp.eq.f32.partialorder %v962_v30, 8.507059e+37 }
 0x22f   :  { %v941_v10 = vmul.f32 %v1244_v5, %v940_v8 }
 0x231   :  { %v1246_v13 = vpop.eup %1245  ;;  %v942_v19 = vadd.f32 %v1244_v5, %v941_v10 }
 0x232   :  { %v1248_v14 = vpop.eup %1247  ;;  %v742_v46 = vadd.f32 1.0, %v1246_v13 }
 0x233   :  { %v946_v16 = vsel %vm945_vm6, %v1244_v5, %v942_v19  ;;  %v954_v15 = vmul.f32 %v1248_v14, %v741_v38  ;;  %vm959_vm9 = vweird.f32 %v1248_v14 }
 0x234   :  { %v951_v12 = vsel %vm948_vm8, %v950_v55, %v946_v16  ;;  %1249 = vrcp.f32 %v742_v46  ;;  %vm960_vm11 = vmor %vm958_vm10, %vm959_vm9  ;;  %v979_v41 = vand.u32 2147483648, %v742_v46  ;;  %v977_v43 = vand.u32 2147483647, %v742_v46 }
 0x235   :  { %v996_v3 = vsel %vm1576_vm7, %v951_v12, %v1712_v25  ;;  %v955_v24 = vsub.f32 1.0, %v954_v15  ;;  %vm973_vm14 = vweird.f32 %v742_v46 }
 0x236   :  { %1012 = vst [vmem:[#allocation2 + $0x68] sm:$0xff] %v996_v3  ;;  %v980_v45 = vor.u32 1.1754944e-38, %v979_v41  ;;  %vm978_vm0 = vcmp.eq.f32.partialorder %v977_v43, 8.507059e+37 }
 0x237   :  { %v956_v29 = vmul.f32 %v1248_v14, %v955_v24 }
 0x239   :  { %v957_v36 = vadd.f32 %v1248_v14, %v956_v29 }
 0x23a   :  { %v1250_v31 = vpop.eup %1249 }
 0x23b   :  { %v961_v23 = vsel %vm960_vm11, %v1248_v14, %v957_v36  ;;  %v969_v35 = vmul.f32 %v1250_v31, %v742_v46  ;;  %vm974_vm13 = vweird.f32 %v1250_v31 }
 0x23c   :  { %v966_v40 = vsel %vm963_vm12, %v965_v32, %v961_v23  ;;  %vm975_vm15 = vmor %vm973_vm14, %vm974_vm13 }
 0x23d   :  { %v997_v56 = vsel %vm1576_vm7, %v966_v40, %v1727_v52  ;;  %v970_v25 = vsub.f32 1.0, %v969_v35 }
 0x23e   :  { %1013 = vst [vmem:[#allocation2 + $0x70] sm:$0xff] %v997_v56 }
 0x23f   :  { %v971_v42 = vmul.f32 %v1250_v31, %v970_v25 }
 0x241   :  { %v972_v63 = vadd.f32 %v1250_v31, %v971_v42 }
 0x243   :  { %v976_v48 = vsel %vm975_vm15, %v1250_v31, %v972_v63 }
 0x244   :  { %v981_v49 = vsel %vm978_vm0, %v980_v45, %v976_v48 }
 0x245   :  { %v998_v50 = vsel %vm1576_vm7, %v981_v49, %v1736_v21 }
 0x246   :  { %1014 = vst [vmem:[#allocation2 + $0x78] sm:$0xff] %v998_v50 }
 0x247   :  { %1027 = dma.vmem_to_hbm [thread:$0]  %s1020_s23, 2048, %s1022_s26, [#allocation3], %s1280_s27, %s1280_s27, %s1281_s28  }
 0x248   :  { %1275 = dma.done.wait [#allocation3], 2048  }
 0x249   :  { %1276 = vsyncadd [#allocation3], 4294965248 }
 0x24a   :  { %1032 = vsyncpa [#allocation3], 1 }

// kernel: tpu_custom_call.1
= control target key start
LH: loop header
LB: loop body
LE: loop exit
PB: predicated region body
PF: predicated region fallthrough
CT: control target
= control target key end

     0   :  { %s1754_s0 = inlined_call_operand.vmem [shape: bf16[128,32], index: 0, kind: input, shape index: {}]   ;;  %s1755_s1 = inlined_call_operand.vmem [shape: f32[128,2], index: 1, kind: input, shape index: {}]   ;;  %s1756_s2 = inlined_call_operand.vmem [shape: bf16[32,64], index: 2, kind: input, shape index: {}]   ;;  %s1757_s3 = inlined_call_operand.vmem [shape: f32[1,64], index: 3, kind: input, shape index: {}]   ;;  %s1758_s4 = inlined_call_operand.vmem [shape: bf16[64,64], index: 4, kind: input, shape index: {}]   ;;  %s1759_s5 = inlined_call_operand.vmem [shape: f32[1,64], index: 5, kind: input, shape index: {}]   ;;  %s1760_s6 = inlined_call_operand.vmem [shape: bf16[64,128], index: 6, kind: input, shape index: {}]   ;;  %s1761_s7 = inlined_call_operand.vmem [shape: f32[1,128], index: 7, kind: input, shape index: {}]   ;;  %s1762_s8 = inlined_call_operand.hbm [shape: f32[128,128], index: 8, kind: output, shape index: {}]  }
   0x1   :  { %v1154_v0 = vld [vmem:[%s1756_s2 + $0x8] sm:$0xff]  ;;  %v1153_v1 = vld [vmem:[%s1756_s2] sm:$0xff] }
   0x2   :  { %138 = vmatpush.bf16.msra.mxu0 %v1154_v0  ;;  %1163 = vmatpush.bf16.msra.mxu3 %v1154_v0 }
   0x3   :  { %13 = vsyncpa [#allocation3], 0  ;;  %v1145_v2 = vld [vmem:[%s1754_s0] sm:$0xff]  ;;  %vm107_vm0 = vcmask 261120   ;;  %v1146_v3 = vld [vmem:[%s1754_s0 + $0x8] sm:$0xff]  ;;  %vm241_vm1 = vcmask 523264  }
   0x4   :  { %v1147_v4 = vld [vmem:[%s1754_s0 + $0x10] sm:$0xff]  ;;  %v1148_v5 = vld [vmem:[%s1754_s0 + $0x18] sm:$0xff]  ;;  %v1149_v6 = vld [vmem:[%s1754_s0 + $0x20] sm:$0xff]  ;;  %v1277_v59 = vmov 0   ;;  %s1021_s26 = sshll.u32 %s1762_s8, 4  ;;  %s1280_s27 = smov 128   ;;  %s1022_s26 = int_to_ptr.hbm [resolvable:$true] %s1021_s26 }
   0x5   :  { %v1152_v7 = vld [vmem:[%s1754_s0 + $0x38] sm:$0xff]  ;;  %v1150_v8 = vld [vmem:[%s1754_s0 + $0x28] sm:$0xff]  ;;  %v1151_v10 = vld [vmem:[%s1754_s0 + $0x30] sm:$0xff]  ;;  %1179 = vset.pattern.permute.xlu1 %v1277_v59  ;;  %1178 = vset.pattern.permute.xlu0 %v1277_v59  ;;  %s1281_s28 = smov 8  }
   0x6   :  { %139 = vmatpush.bf16.msra.mxu0 %v1153_v1  ;;  %1164 = vmatpush.bf16.msra.mxu3 %v1153_v1  ;;  %v1158_v9 = vld [vmem:[%s1758_s4 + $0x18] sm:$0xff]  ;;  %v1157_v11 = vld [vmem:[%s1758_s4 + $0x10] sm:$0xff]  ;;  %v1156_v12 = vld [vmem:[%s1758_s4 + $0x8] sm:$0xff] }
   0x7   :  { %270 = vmatpush.bf16.msra.mxu1 %v1158_v9  ;;  %v1155_v13 = vld [vmem:[%s1758_s4] sm:$0xff]  ;;  %v1403_v57 = vld [vmem:[%s1755_s1 + $0x10] sm:$0xff]  ;;  %1180 = vset.pattern.permute.xlu2 %v1277_v59  ;;  %v1162_v0 = vld [vmem:[%s1760_s6 + $0x18] sm:$0xff] }
   0x8   :  { %v1380_v15 = vld [vmem:[%s1757_s3] ss:$0 sm:$0xff]  ;;  %479 = vperm.xlu1 %1179, %v1403_v57   ;;  %403 = vmatpush.bf16.msra.mxu2 %v1162_v0 }
   0x9   :  { %1073 = vmatmul.msk.bf16.vlgmr.msra.gmra.mxu0 %vm107_vm0, %v1145_v2  ;;  %1080 = vmatmul.msk.bf16.vlgmr.msra.gmra.mxu3 %vm107_vm0, %v1152_v7 }
   0xa   :  { %1165 = vmatpush.bf16.msrb.mxu3 %v1158_v9 }
   0xb   :  { %271 = vmatpush.bf16.msra.mxu1 %v1157_v11 }
   0xe   :  { %1166 = vmatpush.bf16.msrb.mxu3 %v1157_v11  ;;  %v455_v11 = vld [vmem:[%s1755_s1 + $0x38] sm:$0xff] }
   0xf   :  { %272 = vmatpush.bf16.msra.mxu1 %v1156_v12 }
  0x12   :  { %1167 = vmatpush.bf16.msrb.mxu3 %v1156_v12  ;;  %v449_v12 = vld [vmem:[%s1755_s1 + $0x8] sm:$0xff] }
  0x13   :  { %273 = vmatpush.bf16.msra.mxu1 %v1155_v13 }
  0x16   :  { %1168 = vmatpush.bf16.msrb.mxu3 %v1155_v13  ;;  %v1159_v13 = vld [vmem:[%s1760_s6] sm:$0xff] }
  0x19   :  { %1074 = vmatmul.msk.bf16.gmra.mxu0 %vm107_vm0, %v1146_v3 }
  0x1a   :  { %1169 = vmatpush.bf16.msra.mxu3 %v1162_v0 }
  0x29   :  { %1075 = vmatmul.msk.bf16.gmra.mxu0 %vm107_vm0, %v1147_v4  ;;  %v451_v4 = vld [vmem:[%s1755_s1 + $0x18] sm:$0xff] }
  0x2a   :  { %484 = vperm.xlu1 %1179, %v451_v4  }
  0x32   :  { %504 = vperm.xlu1 %1179, %v455_v11  }
  0x39   :  { %1076 = vmatmul.msk.bf16.gmra.mxu0 %vm107_vm0, %v1148_v5  ;;  %v448_v5 = vld [vmem:[%s1755_s1] sm:$0xff] }
  0x3a   :  { %469 = vperm.xlu0 %1178, %v448_v5  }
  0x42   :  { %474 = vperm.xlu0 %1178, %v449_v12  }
  0x49   :  { %1077 = vmatmul.msk.bf16.gmra.mxu0 %vm107_vm0, %v1149_v6  ;;  %v1161_v6 = vld [vmem:[%s1760_s6 + $0x10] sm:$0xff] }
  0x4a   :  { %404 = vmatpush.bf16.msra.mxu2 %v1161_v6  ;;  %1170 = vmatpush.bf16.msra.mxu3 %v1161_v6 }
  0x59   :  { %1078 = vmatmul.msk.bf16.gmra.mxu0 %vm107_vm0, %v1150_v8  ;;  %v1160_v8 = vld [vmem:[%s1760_s6 + $0x8] sm:$0xff] }
  0x5a   :  { %405 = vmatpush.bf16.msra.mxu2 %v1160_v8  ;;  %1171 = vmatpush.bf16.msra.mxu3 %v1160_v8 }
  0x5e   :  { %406 = vmatpush.bf16.msra.mxu2 %v1159_v13  ;;  %1172 = vmatpush.bf16.msra.mxu3 %v1159_v13 }
  0x69   :  { %1079 = vmatmul.msk.bf16.gmra.mxu0 %vm107_vm0, %v1151_v10 }
  0x7a   :  { %v480_v8 = vpop.permute.xlu1 %479 }
  0x86   :  { %v141_v14 = vpop.f32.mrf.mxu0 }
  0x87   :  { %v142_v16 = vadd.f32 %v1380_v15, %v141_v14 }
  0x89   :  { %v181_v19 = vmax.f32 %v142_v16, 0.0 }
  0x8c   :  { %v176_v62 = vpop.f32.mrf.mxu3 }
  0x8d   :  { %v177_v9 = vadd.f32 %v1380_v15, %v176_v62 }
  0x8e   :  { %v143_v17 = vpop.f32.mrf.mxu0 }
  0x8f   :  { %v144_v18 = vadd.f32 %v1380_v15, %v143_v17  ;;  %v195_v14 = vmax.f32 %v177_v9, 0.0 }
  0x91   :  { %v182_v20 = vmax.f32 %v144_v18, 0.0  ;;  %v1441_v18 = vld [vmem:[%s1755_s1 + $0x30] sm:$0xff] }
  0x92   :  { %499 = vperm.xlu0 %1178, %v1441_v18  }
  0x93   :  { %v198_v21 = vpack.c.bf16 %v182_v20, %v181_v19  ;;  %v452_v19 = vld [vmem:[%s1755_s1 + $0x20] sm:$0xff]  ;;  %v461_v20 = vld [vmem:[%s1755_s1 + $0x68] sm:$0xff] }
  0x94   :  { %v178_v7 = vpop.f32.mrf.mxu3  ;;  %489 = vperm.xlu2 %1180, %v452_v19  }
  0x95   :  { %1097 = vmatmul.msk.bf16.vlgmr.msra.gmra.mxu1 %vm241_vm1, %v198_v21  ;;  %v179_v10 = vadd.f32 %v1380_v15, %v178_v7  ;;  %v1454_v21 = vld [vmem:[%s1755_s1 + $0x48] sm:$0xff] }
  0x96   :  { %v146_v22 = vpop.f32.mrf.mxu0 }
  0x97   :  { %v147_v23 = vadd.f32 %v1380_v15, %v146_v22  ;;  %v196_v16 = vmax.f32 %v179_v10, 0.0 }
  0x99   :  { %v183_v26 = vmax.f32 %v147_v23, 0.0  ;;  %v205_v17 = vpack.c.bf16 %v196_v16, %v195_v14  ;;  %v453_v23 = vld [vmem:[%s1755_s1 + $0x28] sm:$0xff] }
  0x9a   :  { %514 = vperm.xlu0 %1178, %v1454_v21  }
  0x9c   :  { %494 = vperm.xlu2 %1180, %v453_v23  }
  0x9e   :  { %v148_v24 = vpop.f32.mrf.mxu0 }
  0x9f   :  { %v149_v25 = vadd.f32 %v1380_v15, %v148_v24  ;;  %v460_v24 = vld [vmem:[%s1755_s1 + $0x60] sm:$0xff] }
  0xa1   :  { %v184_v27 = vmax.f32 %v149_v25, 0.0  ;;  %v1278_v25 = vmov 1  }
  0xa2   :  { %529 = vperm.xlu0 %1178, %v460_v24  }
  0xa3   :  { %v199_v28 = vpack.c.bf16 %v184_v27, %v183_v26  ;;  %v1466_v26 = vld [vmem:[%s1759_s5] ss:$0 sm:$0xff] }
  0xa5   :  { %1098 = vmatmul.msk.bf16.gmra.mxu1 %vm241_vm1, %v199_v28 }
  0xa6   :  { %v151_v29 = vpop.f32.mrf.mxu0 }
  0xa7   :  { %v152_v30 = vadd.f32 %v1380_v15, %v151_v29 }
  0xa9   :  { %v185_v33 = vmax.f32 %v152_v30, 0.0  ;;  %v456_v30 = vld [vmem:[%s1755_s1 + $0x40] sm:$0xff] }
  0xaa   :  { %509 = vperm.xlu2 %1180, %v456_v30  }
  0xac   :  { %v470_v9 = vpop.permute.xlu0 %469 }
  0xae   :  { %v153_v31 = vpop.f32.mrf.mxu0 }
  0xaf   :  { %v154_v32 = vadd.f32 %v1380_v15, %v153_v31  ;;  %v463_v31 = vld [vmem:[%s1755_s1 + $0x78] sm:$0xff] }
  0xb0   :  { %544 = vperm.xlu0 %1178, %v463_v31  }
  0xb1   :  { %v186_v34 = vmax.f32 %v154_v32, 0.0 }
  0xb3   :  { %v200_v35 = vpack.c.bf16 %v186_v34, %v185_v33 }
  0xb5   :  { %1099 = vmatmul.msk.bf16.gmra.mxu1 %vm241_vm1, %v200_v35 }
  0xb6   :  { %v156_v36 = vpop.f32.mrf.mxu0 }
  0xb7   :  { %v157_v37 = vadd.f32 %v1380_v15, %v156_v36  ;;  %v459_v36 = vld [vmem:[%s1755_s1 + $0x58] sm:$0xff] }
  0xb8   :  { %524 = vperm.xlu2 %1180, %v459_v36   ;;  %1183 = vset.pattern.permute.xlu0 %v1278_v25 }
  0xb9   :  { %v187_v40 = vmax.f32 %v157_v37, 0.0  ;;  %589 = vperm.xlu0 %1183, %v1403_v57  }
  0xbe   :  { %v158_v38 = vpop.f32.mrf.mxu0 }
  0xbf   :  { %v159_v39 = vadd.f32 %v1380_v15, %v158_v38 }
  0xc1   :  { %v188_v41 = vmax.f32 %v159_v39, 0.0  ;;  %609 = vperm.xlu0 %1183, %v455_v11  }
  0xc3   :  { %v201_v42 = vpack.c.bf16 %v188_v41, %v187_v40  ;;  %v462_v40 = vld [vmem:[%s1755_s1 + $0x70] sm:$0xff] }
  0xc4   :  { %539 = vperm.xlu2 %1180, %v462_v40  }
  0xc5   :  { %1100 = vmatmul.msk.bf16.gmra.mxu1 %vm241_vm1, %v201_v42 }
  0xc6   :  { %v161_v43 = vpop.f32.mrf.mxu0 }
  0xc7   :  { %v162_v44 = vadd.f32 %v1380_v15, %v161_v43 }
  0xc9   :  { %v189_v47 = vmax.f32 %v162_v44, 0.0 }
  0xcc   :  { %1182 = vset.pattern.permute.xlu2 %v1278_v25 }
  0xcd   :  { %585 = vperm.xlu2 %1182, %v449_v12   ;;  %v1503_v12 = vpop.permute.xlu1 %484 }
  0xce   :  { %v163_v45 = vpop.f32.mrf.mxu0 }
  0xcf   :  { %v164_v46 = vadd.f32 %v1380_v15, %v163_v45 }
  0xd1   :  { %v190_v48 = vmax.f32 %v164_v46, 0.0 }
  0xd3   :  { %v202_v49 = vpack.c.bf16 %v190_v48, %v189_v47 }
  0xd5   :  { %1101 = vmatmul.msk.bf16.gmra.mxu1 %vm241_vm1, %v202_v49  ;;  %597 = vperm.xlu2 %1182, %v452_v19  }
  0xd6   :  { %v166_v50 = vpop.f32.mrf.mxu0 }
  0xd7   :  { %v167_v51 = vadd.f32 %v1380_v15, %v166_v50 }
  0xd9   :  { %v191_v54 = vmax.f32 %v167_v51, 0.0 }
  0xdd   :  { %605 = vperm.xlu2 %1182, %v1441_v18  }
  0xde   :  { %v168_v52 = vpop.f32.mrf.mxu0 }
  0xdf   :  { %v169_v53 = vadd.f32 %v1380_v15, %v168_v52 }
  0xe1   :  { %v192_v55 = vmax.f32 %v169_v53, 0.0 }
  0xe3   :  { %v203_v56 = vpack.c.bf16 %v192_v55, %v191_v54 }
  0xe5   :  { %1102 = vmatmul.msk.bf16.gmra.mxu1 %vm241_vm1, %v203_v56  ;;  %617 = vperm.xlu2 %1182, %v1454_v21   ;;  %v1509_v21 = vpop.permute.xlu1 %504 }
  0xe6   :  { %v171_v58 = vpop.f32.mrf.mxu0 }
  0xe7   :  { %v172_v60 = vadd.f32 %v1380_v15, %v171_v58 }
  0xe9   :  { %v193_v1 = vmax.f32 %v172_v60, 0.0 }
  0xed   :  { %629 = vperm.xlu2 %1182, %v460_v24  }
  0xee   :  { %v173_v61 = vpop.f32.mrf.mxu0  ;;  %v1501_v11 = vpop.permute.xlu2 %489 }
  0xef   :  { %v174_v63 = vadd.f32 %v1380_v15, %v173_v61  ;;  %v458_v15 = vld [vmem:[%s1755_s1 + $0x50] sm:$0xff] }
  0xf0   :  { %519 = vperm.xlu1 %1179, %v458_v15   ;;  %621 = vperm.xlu0 %1183, %v458_v15  }
  0xf1   :  { %v194_v2 = vmax.f32 %v174_v63, 0.0 }
  0xf3   :  { %v204_v3 = vpack.c.bf16 %v194_v2, %v193_v1 }
  0xf5   :  { %1103 = vmatmul.msk.bf16.vlgmr.msrb.gmra.mxu3 %vm241_vm1, %v204_v3  ;;  %641 = vperm.xlu2 %1182, %v463_v31  }
  0xf6   :  { %v1507_v19 = vpop.permute.xlu2 %494 }
  0xf8   :  { %534 = vperm.xlu1 %1179, %v461_v20   ;;  %633 = vperm.xlu0 %1183, %v461_v20  }
 0x100   :  { %1181 = vset.pattern.permute.xlu1 %v1278_v25 }
 0x101   :  { %581 = vperm.xlu1 %1181, %v448_v5  }
 0x104   :  { %v1514_v24 = vpop.permute.xlu2 %509 }
 0x105   :  { %1104 = vmatmul.msk.bf16.gmra.mxu3 %vm241_vm1, %v205_v17  ;;  %v475_v17 = vpop.permute.xlu0 %474 }
 0x109   :  { %593 = vperm.xlu1 %1181, %v451_v4  }
 0x111   :  { %601 = vperm.xlu1 %1181, %v453_v23   ;;  %v1512_v23 = vpop.permute.xlu0 %499 }
 0x112   :  { %v275_v22 = vpop.f32.mrf.mxu1 }
 0x113   :  { %v276_v27 = vadd.f32 %v1466_v26, %v275_v22 }
 0x115   :  { %v315_v32 = vmax.f32 %v276_v27, 0.0 }
 0x119   :  { %613 = vperm.xlu1 %1181, %v456_v30  }
 0x11a   :  { %v277_v28 = vpop.f32.mrf.mxu1 }
 0x11b   :  { %v278_v29 = vadd.f32 %v1466_v26, %v277_v28 }
 0x11d   :  { %v316_v33 = vmax.f32 %v278_v29, 0.0 }
 0x11f   :  { %v332_v34 = vpack.c.bf16 %v316_v33, %v315_v32  ;;  %v1520_v33 = vpop.permute.xlu0 %514 }
 0x121   :  { %1121 = vmatmul.msk.bf16.vlgmr.msra.gmra.mxu2 %vm241_vm1, %v332_v34  ;;  %625 = vperm.xlu1 %1181, %v459_v36   ;;  %v1523_v34 = vpop.permute.xlu2 %524 }
 0x122   :  { %v280_v35 = vpop.f32.mrf.mxu1 }
 0x123   :  { %v281_v37 = vadd.f32 %v1466_v26, %v280_v35  ;;  %v464_v35 = vlaneseq }
 0x125   :  { %v317_v41 = vmax.f32 %v281_v37, 0.0  ;;  %v1527_v37 = vand.u32 127, %v464_v35 }
 0x127   :  { %vm466_vm2 = vcmp.eq.s32.totalorder %v1527_v37, 2  ;;  %vm579_vm3 = vcmp.eq.s32.totalorder %v1527_v37, 3  ;;  %vm676_vm4 = vcmp.ge.s32.totalorder %v1527_v37, 2  ;;  %vm677_vm5 = vcmp.lt.s32.totalorder %v1527_v37, 6 }
 0x128   :  { %vm1576_vm7 = vmand %vm676_vm4, %vm677_vm5 }
 0x129   :  { %637 = vperm.xlu1 %1181, %v462_v40  }
 0x12a   :  { %v282_v38 = vpop.f32.mrf.mxu1 }
 0x12b   :  { %v283_v39 = vadd.f32 %v1466_v26, %v282_v38  ;;  %v1529_v38 = vpop.permute.xlu0 %529 }
 0x12d   :  { %v318_v42 = vmax.f32 %v283_v39, 0.0  ;;  %v1537_v39 = vpop.permute.xlu2 %539 }
 0x12f   :  { %v333_v43 = vpack.c.bf16 %v318_v42, %v317_v41  ;;  %v547_v41 = vsel %vm466_vm2, %v470_v9, 0.0 }
 0x131   :  { %1122 = vmatmul.msk.bf16.gmra.mxu2 %vm241_vm1, %v333_v43 }
 0x132   :  { %v285_v44 = vpop.f32.mrf.mxu1 }
 0x133   :  { %v286_v45 = vadd.f32 %v1466_v26, %v285_v44 }
 0x135   :  { %v319_v48 = vmax.f32 %v286_v45, 0.0 }
 0x13a   :  { %v287_v46 = vpop.f32.mrf.mxu1 }
 0x13b   :  { %v288_v47 = vadd.f32 %v1466_v26, %v287_v46 }
 0x13d   :  { %v320_v49 = vmax.f32 %v288_v47, 0.0  ;;  %v1547_v47 = vpop.permute.xlu0 %544 }
 0x13f   :  { %v334_v50 = vpack.c.bf16 %v320_v49, %v319_v48  ;;  %v586_v49 = vpop.permute.xlu2 %585 }
 0x141   :  { %1123 = vmatmul.msk.bf16.gmra.mxu2 %vm241_vm1, %v334_v50  ;;  %v548_v50 = vsel %vm466_vm2, %v475_v17, 0.0 }
 0x142   :  { %v290_v51 = vpop.f32.mrf.mxu1 }
 0x143   :  { %v291_v52 = vadd.f32 %v1466_v26, %v290_v51 }
 0x145   :  { %v321_v55 = vmax.f32 %v291_v52, 0.0 }
 0x14a   :  { %v292_v53 = vpop.f32.mrf.mxu1 }
 0x14b   :  { %v293_v54 = vadd.f32 %v1466_v26, %v292_v53  ;;  %v645_v53 = vsel %vm579_vm3, %v586_v49, 0.0 }
 0x14d   :  { %v322_v56 = vmax.f32 %v293_v54, 0.0 }
 0x14f   :  { %v335_v57 = vpack.c.bf16 %v322_v56, %v321_v55 }
 0x151   :  { %1124 = vmatmul.msk.bf16.gmra.mxu2 %vm241_vm1, %v335_v57 }
 0x152   :  { %v295_v58 = vpop.f32.mrf.mxu1 }
 0x153   :  { %v296_v59 = vadd.f32 %v1466_v26, %v295_v58  ;;  %v590_v58 = vpop.permute.xlu0 %589 }
 0x155   :  { %v323_v62 = vmax.f32 %v296_v59, 0.0  ;;  %v549_v59 = vsel %vm466_vm2, %v480_v8, 0.0 }
 0x15a   :  { %v297_v60 = vpop.f32.mrf.mxu1 }
 0x15b   :  { %v298_v61 = vadd.f32 %v1466_v26, %v297_v60 }
 0x15d   :  { %v324_v63 = vmax.f32 %v298_v61, 0.0 }
 0x15f   :  { %v336_v0 = vpack.c.bf16 %v324_v63, %v323_v62  ;;  %v646_v63 = vsel %vm579_vm3, %v590_v58, 0.0 }
 0x161   :  { %1125 = vmatmul.msk.bf16.gmra.mxu2 %vm241_vm1, %v336_v0 }
 0x162   :  { %v300_v1 = vpop.f32.mrf.mxu1  ;;  %v1517_v27 = vpop.permute.xlu1 %519 }
 0x163   :  { %v301_v2 = vadd.f32 %v1466_v26, %v300_v1 }
 0x165   :  { %v325_v5 = vmax.f32 %v301_v2, 0.0 }
 0x16a   :  { %v302_v3 = vpop.f32.mrf.mxu1  ;;  %v1525_v36 = vpop.permute.xlu1 %534 }
 0x16b   :  { %v303_v4 = vadd.f32 %v1466_v26, %v302_v3 }
 0x16d   :  { %v326_v6 = vmax.f32 %v303_v4, 0.0 }
 0x16f   :  { %v337_v7 = vpack.c.bf16 %v326_v6, %v325_v5  ;;  %v550_v6 = vsel %vm466_vm2, %v1503_v12, 0.0 }
 0x171   :  { %1126 = vmatmul.msk.bf16.gmra.mxu2 %vm241_vm1, %v337_v7 }
 0x173   :  { %v582_v40 = vpop.permute.xlu1 %581 }
 0x174   :  { %v644_v44 = vsel %vm579_vm3, %v582_v40, 0.0 }
 0x178   :  { %v305_v10 = vpop.f32.mrf.mxu3 }
 0x179   :  { %v306_v13 = vadd.f32 %v1466_v26, %v305_v10 }
 0x17b   :  { %v327_v15 = vmax.f32 %v306_v13, 0.0  ;;  %v594_v4 = vpop.permute.xlu1 %593 }
 0x17c   :  { %v647_v13 = vsel %vm579_vm3, %v594_v4, 0.0 }
 0x180   :  { %v307_v14 = vpop.f32.mrf.mxu3 }
 0x181   :  { %v308_v16 = vadd.f32 %v1466_v26, %v307_v14 }
 0x183   :  { %v328_v18 = vmax.f32 %v308_v16, 0.0 }
 0x185   :  { %v338_v20 = vpack.c.bf16 %v328_v18, %v327_v15 }
 0x187   :  { %1127 = vmatmul.msk.bf16.vlgmr.msra.gmra.mxu3 %vm241_vm1, %v338_v20 }
 0x188   :  { %v310_v22 = vpop.f32.mrf.mxu3 }
 0x189   :  { %v311_v25 = vadd.f32 %v1466_v26, %v310_v22 }
 0x18b   :  { %v329_v30 = vmax.f32 %v311_v25, 0.0 }
 0x190   :  { %v312_v28 = vpop.f32.mrf.mxu3 }
 0x191   :  { %v313_v29 = vadd.f32 %v1466_v26, %v312_v28  ;;  %v1535_v26 = vld [vmem:[%s1761_s7] ss:$0 sm:$0xff]  ;;  %s1279_s7 = smov [#allocation2]  }
 0x192   :  { %s1019_s23 = sshll.u32 %s1279_s7, 4  ;;  %s1020_s23 = int_to_ptr.vmem [resolvable:$true] %s1019_s23 }
 0x193   :  { %v330_v31 = vmax.f32 %v313_v29, 0.0 }
 0x195   :  { %v339_v32 = vpack.c.bf16 %v330_v31, %v329_v30 }
 0x197   :  { %1128 = vmatmul.msk.bf16.gmra.mxu3 %vm241_vm1, %v339_v32 }
 0x1a4   :  { %v408_v42 = vpop.f32.mrf.mxu2 }
 0x1a5   :  { %v409_v43 = vadd.f32 %v1535_v26, %v408_v42  ;;  %v551_v42 = vsel %vm466_vm2, %v1501_v11, 0.0 }
 0x1a7   :  { %v563_v45 = vadd.f32 %v547_v41, %v409_v43  ;;  %v598_v41 = vpop.permute.xlu2 %597 }
 0x1a9   :  { %v1545_v46 = vadd.f32 %v644_v44, %v563_v45 }
 0x1ab   :  { %v1129_v48 = vmul.f32 -1.442695, %v1545_v46 }
 0x1ac   :  { %v410_v51 = vpop.f32.mrf.mxu2 }
 0x1ad   :  { %1187 = vpow2.f32 %v1129_v48  ;;  %v411_v52 = vadd.f32 %v1535_v26, %v410_v51 }
 0x1af   :  { %v564_v54 = vadd.f32 %v548_v50, %v411_v52  ;;  %v648_v50 = vsel %vm579_vm3, %v598_v41, 0.0 }
 0x1b1   :  { %v1555_v55 = vadd.f32 %v645_v53, %v564_v54 }
 0x1b3   :  { %v1188_v56 = vpop.eup %1187  ;;  %v1130_v57 = vmul.f32 -1.442695, %v1555_v55 }
 0x1b4   :  { %v727_v60 = vadd.f32 1.0, %v1188_v56  ;;  %v413_v61 = vpop.f32.mrf.mxu2 }
 0x1b5   :  { %1189 = vpow2.f32 %v1130_v57  ;;  %v414_v62 = vadd.f32 %v1535_v26, %v413_v61 }
 0x1b6   :  { %1191 = vrcp.f32 %v727_v60  ;;  %v754_v17 = vand.u32 2147483648, %v727_v60  ;;  %v752_v12 = vand.u32 2147483647, %v727_v60  ;;  %vm748_vm8 = vweird.f32 %v727_v60 }
 0x1b7   :  { %v565_v0 = vadd.f32 %v549_v59, %v414_v62 }
 0x1b8   :  { %v755_v30 = vor.u32 1.1754944e-38, %v754_v17  ;;  %vm753_vm10 = vcmp.eq.f32.partialorder %v752_v12, 8.507059e+37 }
 0x1b9   :  { %v1563_v1 = vadd.f32 %v646_v63, %v565_v0  ;;  %v602_v0 = vpop.permute.xlu1 %601 }
 0x1bb   :  { %v1190_v2 = vpop.eup %1189  ;;  %v1131_v3 = vmul.f32 -1.442695, %v1563_v1 }
 0x1bc   :  { %v1192_v5 = vpop.eup %1191  ;;  %v728_v7 = vadd.f32 1.0, %v1190_v2  ;;  %v415_v8 = vpop.f32.mrf.mxu2  ;;  %v552_v2 = vsel %vm466_vm2, %v1507_v19, 0.0 }
 0x1bd   :  { %v744_v9 = vmul.f32 %v1192_v5, %v727_v60  ;;  %1193 = vpow2.f32 %v1131_v3  ;;  %v416_v10 = vadd.f32 %v1535_v26, %v415_v8  ;;  %vm749_vm6 = vweird.f32 %v1192_v5  ;;  %v606_v19 = vpop.permute.xlu2 %605 }
 0x1be   :  { %1195 = vrcp.f32 %v728_v7  ;;  %vm750_vm9 = vmor %vm748_vm8, %vm749_vm6  ;;  %v769_v49 = vand.u32 2147483648, %v728_v7  ;;  %v767_v52 = vand.u32 2147483647, %v728_v7  ;;  %vm763_vm12 = vweird.f32 %v728_v7 }
 0x1bf   :  { %v745_v14 = vsub.f32 1.0, %v744_v9  ;;  %v566_v16 = vadd.f32 %v550_v6, %v416_v10  ;;  %v649_v9 = vsel %vm579_vm3, %v602_v0, 0.0 }
 0x1c0   :  { %vm768_vm14 = vcmp.eq.f32.partialorder %v767_v52, 8.507059e+37 }
 0x1c1   :  { %v746_v15 = vmul.f32 %v1192_v5, %v745_v14  ;;  %v1574_v18 = vadd.f32 %v647_v13, %v566_v16 }
 0x1c3   :  { %v1194_v20 = vpop.eup %1193  ;;  %v747_v25 = vadd.f32 %v1192_v5, %v746_v15  ;;  %v1132_v28 = vmul.f32 -1.442695, %v1574_v18 }
 0x1c4   :  { %v1196_v29 = vpop.eup %1195  ;;  %v729_v31 = vadd.f32 1.0, %v1194_v20  ;;  %v418_v32 = vpop.f32.mrf.mxu2 }
 0x1c5   :  { %v751_v35 = vsel %vm750_vm9, %v1192_v5, %v747_v25  ;;  %v759_v40 = vmul.f32 %v1196_v29, %v728_v7  ;;  %1197 = vpow2.f32 %v1132_v28  ;;  %v419_v48 = vadd.f32 %v1535_v26, %v418_v32 }
 0x1c6   :  { %v756_v43 = vsel %vm753_vm10, %v755_v30, %v751_v35  ;;  %1199 = vrcp.f32 %v729_v31  ;;  %vm764_vm11 = vweird.f32 %v1196_v29  ;;  %v784_v5 = vand.u32 2147483648, %v729_v31 }
 0x1c7   :  { %v983_v44 = vsel %vm1576_vm7, %v756_v43, %v1545_v46  ;;  %v760_v45 = vsub.f32 1.0, %v759_v40  ;;  %v567_v53 = vadd.f32 %v551_v42, %v419_v48  ;;  %vm765_vm13 = vmor %vm763_vm12, %vm764_vm11  ;;  %v770_v46 = vor.u32 1.1754944e-38, %v769_v49  ;;  %v610_v49 = vpop.permute.xlu0 %609 }
 0x1c8   :  { %999 = vst [vmem:[#allocation2] sm:$0xff] %v983_v44  ;;  %v782_v8 = vand.u32 2147483647, %v729_v31  ;;  %vm778_vm0 = vweird.f32 %v729_v31  ;;  %v785_v16 = vor.u32 1.1754944e-38, %v784_v5  ;;  %v650_v32 = vsel %vm579_vm3, %v606_v19, 0.0  ;;  %v614_v5 = vpop.permute.xlu1 %613 }
 0x1c9   :  { %v761_v51 = vmul.f32 %v1196_v29, %v760_v45  ;;  %v1590_v56 = vadd.f32 %v648_v50, %v567_v53 }
 0x1ca   :  { %vm783_vm4 = vcmp.eq.f32.partialorder %v782_v8, 8.507059e+37 }
 0x1cb   :  { %v1198_v54 = vpop.eup %1197  ;;  %v762_v11 = vadd.f32 %v1196_v29, %v761_v51  ;;  %v1133_v62 = vmul.f32 -1.442695, %v1590_v56 }
 0x1cc   :  { %v1200_v57 = vpop.eup %1199  ;;  %v730_v58 = vadd.f32 1.0, %v1198_v54  ;;  %v420_v59 = vpop.f32.mrf.mxu2  ;;  %v554_v54 = vsel %vm466_vm2, %v1509_v21, 0.0 }
 0x1cd   :  { %v766_v60 = vsel %vm765_vm13, %v1196_v29, %v762_v11  ;;  %v774_v61 = vmul.f32 %v1200_v57, %v729_v31  ;;  %v421_v6 = vadd.f32 %v1535_v26, %v420_v59  ;;  %vm779_vm15 = vweird.f32 %v1200_v57 }
 0x1ce   :  { %v771_v63 = vsel %vm768_vm14, %v770_v46, %v766_v60  ;;  %1201 = vrcp.f32 %v730_v58  ;;  %vm780_vm1 = vmor %vm778_vm0, %vm779_vm15  ;;  %v797_v41 = vand.u32 2147483647, %v730_v58  ;;  %v799_v42 = vand.u32 2147483648, %v730_v58 }
 0x1cf   :  { %v984_v3 = vsel %vm1576_vm7, %v771_v63, %v1555_v55  ;;  %v775_v4 = vsub.f32 1.0, %v774_v61  ;;  %1203 = vpow2.f32 %v1133_v62  ;;  %v568_v10 = vadd.f32 %v552_v2, %v421_v6 }
 0x1d0   :  { %1000 = vst [vmem:[#allocation2 + $0x8] sm:$0xff] %v984_v3  ;;  %v553_v55 = vsel %vm466_vm2, %v1512_v23, 0.0  ;;  %vm793_vm6 = vweird.f32 %v730_v58  ;;  %v800_v50 = vor.u32 1.1754944e-38, %v799_v42  ;;  %vm798_vm9 = vcmp.eq.f32.partialorder %v797_v41, 8.507059e+37 }
 0x1d1   :  { %v776_v7 = vmul.f32 %v1200_v57, %v775_v4  ;;  %v1605_v17 = vadd.f32 %v649_v9, %v568_v10  ;;  %v555_v9 = vsel %vm466_vm2, %v1514_v24, 0.0  ;;  %v556_v41 = vsel %vm466_vm2, %v1520_v33, 0.0 }
 0x1d3   :  { %v777_v13 = vadd.f32 %v1200_v57, %v776_v7  ;;  %v1134_v31 = vmul.f32 -1.442695, %v1605_v17 }
 0x1d4   :  { %v1202_v14 = vpop.eup %1201  ;;  %v423_v15 = vpop.f32.mrf.mxu2 }
 0x1d5   :  { %v1204_v12 = vpop.eup %1203  ;;  %v781_v20 = vsel %vm780_vm1, %v1200_v57, %v777_v13  ;;  %v789_v25 = vmul.f32 %v1202_v14, %v730_v58  ;;  %v424_v28 = vadd.f32 %v1535_v26, %v423_v15  ;;  %vm794_vm5 = vweird.f32 %v1202_v14 }
 0x1d6   :  { %v786_v29 = vsel %vm783_vm4, %v785_v16, %v781_v20  ;;  %v731_v30 = vadd.f32 1.0, %v1204_v12  ;;  %vm795_vm8 = vmor %vm793_vm6, %vm794_vm5  ;;  %v651_v57 = vsel %vm579_vm3, %v610_v49, 0.0  ;;  %v652_v13 = vsel %vm579_vm3, %v614_v5, 0.0 }
 0x1d7   :  { %v985_v23 = vsel %vm1576_vm7, %v786_v29, %v1563_v1  ;;  %v790_v35 = vsub.f32 1.0, %v789_v25  ;;  %v569_v40 = vadd.f32 %v553_v55, %v424_v28  ;;  %v557_v5 = vsel %vm466_vm2, %v1517_v27, 0.0 }
 0x1d8   :  { %1001 = vst [vmem:[#allocation2 + $0x10] sm:$0xff] %v985_v23  ;;  %1205 = vrcp.f32 %v731_v30  ;;  %v814_v0 = vand.u32 2147483648, %v731_v30  ;;  %v812_v3 = vand.u32 2147483647, %v731_v30  ;;  %vm808_vm11 = vweird.f32 %v731_v30 }
 0x1d9   :  { %v791_v43 = vmul.f32 %v1202_v14, %v790_v35  ;;  %1207 = vpow2.f32 %v1134_v31  ;;  %v1614_v44 = vadd.f32 %v650_v32, %v569_v40 }
 0x1da   :  { %v815_v10 = vor.u32 1.1754944e-38, %v814_v0  ;;  %vm813_vm13 = vcmp.eq.f32.partialorder %v812_v3, 8.507059e+37 }
 0x1db   :  { %v792_v45 = vadd.f32 %v1202_v14, %v791_v43  ;;  %v1135_v48 = vmul.f32 -1.442695, %v1614_v44 }
 0x1dc   :  { %v425_v51 = vpop.f32.mrf.mxu2 }
 0x1dd   :  { %v796_v1 = vsel %vm795_vm8, %v1202_v14, %v792_v45  ;;  %1209 = vpow2.f32 %v1135_v48  ;;  %v426_v52 = vadd.f32 %v1535_v26, %v425_v51 }
 0x1de   :  { %v1206_v53 = vpop.eup %1205  ;;  %v801_v11 = vsel %vm798_vm9, %v800_v50, %v796_v1 }
 0x1df   :  { %v1208_v46 = vpop.eup %1207  ;;  %v986_v58 = vsel %vm1576_vm7, %v801_v11, %v1574_v18  ;;  %v804_v59 = vmul.f32 %v1206_v53, %v731_v30  ;;  %v570_v60 = vadd.f32 %v554_v54, %v426_v52  ;;  %vm809_vm10 = vweird.f32 %v1206_v53 }
 0x1e0   :  { %1002 = vst [vmem:[#allocation2 + $0x18] sm:$0xff] %v986_v58  ;;  %v732_v61 = vadd.f32 1.0, %v1208_v46  ;;  %vm810_vm12 = vmor %vm808_vm11, %vm809_vm10 }
 0x1e1   :  { %v805_v62 = vsub.f32 1.0, %v804_v59  ;;  %v1626_v63 = vadd.f32 %v651_v57, %v570_v60 }
 0x1e2   :  { %1211 = vrcp.f32 %v732_v61  ;;  %v827_v30 = vand.u32 2147483647, %v732_v61  ;;  %v829_v31 = vand.u32 2147483648, %v732_v61  ;;  %vm823_vm15 = vweird.f32 %v732_v61 }
 0x1e3   :  { %v1210_v2 = vpop.eup %1209  ;;  %v806_v21 = vmul.f32 %v1206_v53, %v805_v62  ;;  %v1136_v4 = vmul.f32 -1.442695, %v1626_v63 }
 0x1e4   :  { %v1629_v6 = vadd.f32 1.0, %v1210_v2  ;;  %v428_v7 = vpop.f32.mrf.mxu2  ;;  %vm828_vm1 = vcmp.eq.f32.partialorder %v827_v30, 8.507059e+37  ;;  %v830_v49 = vor.u32 1.1754944e-38, %v829_v31 }
 0x1e5   :  { %v807_v18 = vadd.f32 %v1206_v53, %v806_v21  ;;  %1213 = vpow2.f32 %v1136_v4  ;;  %v429_v8 = vadd.f32 %v1535_v26, %v428_v7 }
 0x1e6   :  { %1215 = vrcp.f32 %v1629_v6  ;;  %v842_v50 = vand.u32 2147483647, %v1629_v6  ;;  %v844_v51 = vand.u32 2147483648, %v1629_v6  ;;  %vm838_vm5 = vweird.f32 %v1629_v6 }
 0x1e7   :  { %v811_v19 = vsel %vm810_vm12, %v1206_v53, %v807_v18  ;;  %v571_v14 = vadd.f32 %v555_v9, %v429_v8 }
 0x1e8   :  { %v1212_v55 = vpop.eup %1211  ;;  %v816_v16 = vsel %vm813_vm13, %v815_v10, %v811_v19  ;;  %v845_v59 = vor.u32 1.1754944e-38, %v844_v51  ;;  %vm843_vm8 = vcmp.eq.f32.partialorder %v842_v50, 8.507059e+37 }
 0x1e9   :  { %v987_v15 = vsel %vm1576_vm7, %v816_v16, %v1590_v56  ;;  %v819_v12 = vmul.f32 %v1212_v55, %v732_v61  ;;  %v1641_v20 = vadd.f32 %v652_v13, %v571_v14  ;;  %vm824_vm14 = vweird.f32 %v1212_v55  ;;  %v618_v56 = vpop.permute.xlu2 %617 }
 0x1ea   :  { %1003 = vst [vmem:[#allocation2 + $0x20] sm:$0xff] %v987_v15  ;;  %v653_v42 = vsel %vm579_vm3, %v618_v56, 0.0  ;;  %vm825_vm0 = vmor %vm823_vm15, %vm824_vm14 }
 0x1eb   :  { %v1214_v24 = vpop.eup %1213  ;;  %v820_v25 = vsub.f32 1.0, %v819_v12  ;;  %v1137_v28 = vmul.f32 -1.442695, %v1641_v20 }
 0x1ec   :  { %v1216_v29 = vpop.eup %1215  ;;  %v1644_v32 = vadd.f32 1.0, %v1214_v24  ;;  %v430_v23 = vpop.f32.mrf.mxu2  ;;  %v558_v24 = vsel %vm466_vm2, %v1523_v34, 0.0 }
 0x1ed   :  { %v821_v35 = vmul.f32 %v1212_v55, %v820_v25  ;;  %v834_v40 = vmul.f32 %v1216_v29, %v1629_v6  ;;  %1217 = vpow2.f32 %v1137_v28  ;;  %v431_v48 = vadd.f32 %v1535_v26, %v430_v23 }
 0x1ee   :  { %1219 = vrcp.f32 %v1644_v32  ;;  %vm839_vm4 = vweird.f32 %v1216_v29  ;;  %v859_v6 = vand.u32 2147483648, %v1644_v32  ;;  %v857_v8 = vand.u32 2147483647, %v1644_v32 }
 0x1ef   :  { %v822_v43 = vadd.f32 %v1212_v55, %v821_v35  ;;  %v835_v45 = vsub.f32 1.0, %v834_v40  ;;  %v572_v33 = vadd.f32 %v556_v41, %v431_v48  ;;  %vm840_vm6 = vmor %vm838_vm5, %vm839_vm4  ;;  %vm853_vm10 = vweird.f32 %v1644_v32 }
 0x1f0   :  { %v860_v19 = vor.u32 1.1754944e-38, %v859_v6  ;;  %vm858_vm12 = vcmp.eq.f32.partialorder %v857_v8, 8.507059e+37 }
 0x1f1   :  { %v826_v1 = vsel %vm825_vm0, %v1212_v55, %v822_v43  ;;  %v836_v52 = vmul.f32 %v1216_v29, %v835_v45  ;;  %v1660_v46 = vadd.f32 %v653_v42, %v572_v33 }
 0x1f2   :  { %v831_v53 = vsel %vm828_vm1, %v830_v49, %v826_v1 }
 0x1f3   :  { %v1218_v54 = vpop.eup %1217  ;;  %v988_v11 = vsel %vm1576_vm7, %v831_v53, %v1605_v17  ;;  %v837_v57 = vadd.f32 %v1216_v29, %v836_v52  ;;  %v1138_v2 = vmul.f32 -1.442695, %v1660_v46  ;;  %v622_v17 = vpop.permute.xlu0 %621 }
 0x1f4   :  { %v1220_v58 = vpop.eup %1219  ;;  %1004 = vst [vmem:[#allocation2 + $0x28] sm:$0xff] %v988_v11  ;;  %v735_v60 = vadd.f32 1.0, %v1218_v54  ;;  %v433_v61 = vpop.f32.mrf.mxu2  ;;  %v654_v9 = vsel %vm579_vm3, %v622_v17, 0.0 }
 0x1f5   :  { %v841_v62 = vsel %vm840_vm6, %v1216_v29, %v837_v57  ;;  %v849_v0 = vmul.f32 %v1220_v58, %v1644_v32  ;;  %v434_v7 = vadd.f32 %v1535_v26, %v433_v61  ;;  %vm854_vm9 = vweird.f32 %v1220_v58  ;;  %v626_v32 = vpop.permute.xlu1 %625 }
 0x1f6   :  { %v846_v21 = vsel %vm843_vm8, %v845_v59, %v841_v62  ;;  %1221 = vrcp.f32 %v735_v60  ;;  %vm855_vm11 = vmor %vm853_vm10, %vm854_vm9  ;;  %v872_v35 = vand.u32 2147483647, %v735_v60  ;;  %v874_v40 = vand.u32 2147483648, %v735_v60 }
 0x1f7   :  { %v989_v3 = vsel %vm1576_vm7, %v846_v21, %v1614_v44  ;;  %v850_v4 = vsub.f32 1.0, %v849_v0  ;;  %1223 = vpow2.f32 %v1138_v2  ;;  %v573_v10 = vadd.f32 %v557_v5, %v434_v7 }
 0x1f8   :  { %1005 = vst [vmem:[#allocation2 + $0x30] sm:$0xff] %v989_v3  ;;  %v655_v56 = vsel %vm579_vm3, %v626_v32, 0.0  ;;  %vm868_vm14 = vweird.f32 %v735_v60  ;;  %vm873_vm0 = vcmp.eq.f32.partialorder %v872_v35, 8.507059e+37 }
 0x1f9   :  { %v851_v18 = vmul.f32 %v1220_v58, %v850_v4  ;;  %v1676_v27 = vadd.f32 %v654_v9, %v573_v10 }
 0x1fb   :  { %v852_v44 = vadd.f32 %v1220_v58, %v851_v18  ;;  %v1139_v29 = vmul.f32 -1.442695, %v1676_v27  ;;  %v634_v9 = vpop.permute.xlu0 %633 }
 0x1fc   :  { %v1222_v13 = vpop.eup %1221  ;;  %v435_v14 = vpop.f32.mrf.mxu2 }
 0x1fd   :  { %v1224_v55 = vpop.eup %1223  ;;  %v856_v16 = vsel %vm855_vm11, %v1220_v58, %v852_v44  ;;  %v864_v15 = vmul.f32 %v1222_v13, %v735_v60  ;;  %v436_v12 = vadd.f32 %v1535_v26, %v435_v14  ;;  %vm869_vm13 = vweird.f32 %v1222_v13 }
 0x1fe   :  { %v861_v25 = vsel %vm858_vm12, %v860_v19, %v856_v16  ;;  %v736_v28 = vadd.f32 1.0, %v1224_v55  ;;  %vm870_vm15 = vmor %vm868_vm14, %vm869_vm13  ;;  %v559_v60 = vsel %vm466_vm2, %v1529_v38, 0.0 }
 0x1ff   :  { %v990_v30 = vsel %vm1576_vm7, %v861_v25, %v1626_v63  ;;  %v865_v31 = vsub.f32 1.0, %v864_v15  ;;  %v574_v23 = vadd.f32 %v558_v24, %v436_v12  ;;  %v875_v63 = vor.u32 1.1754944e-38, %v874_v40 }
 0x200   :  { %1006 = vst [vmem:[#allocation2 + $0x38] sm:$0xff] %v990_v30  ;;  %1225 = vrcp.f32 %v736_v28  ;;  %v889_v53 = vand.u32 2147483648, %v736_v28  ;;  %v887_v58 = vand.u32 2147483647, %v736_v28  ;;  %vm883_vm4 = vweird.f32 %v736_v28 }
 0x201   :  { %v866_v41 = vmul.f32 %v1222_v13, %v865_v31  ;;  %1227 = vpow2.f32 %v1139_v29  ;;  %v1688_v34 = vadd.f32 %v655_v56, %v574_v23  ;;  %v657_v15 = vsel %vm579_vm3, %v634_v9, 0.0 }
 0x202   :  { %v890_v2 = vor.u32 1.1754944e-38, %v889_v53  ;;  %vm888_vm6 = vcmp.eq.f32.partialorder %v887_v58, 8.507059e+37 }
 0x203   :  { %v867_v42 = vadd.f32 %v1222_v13, %v866_v41  ;;  %v1140_v43 = vmul.f32 -1.442695, %v1688_v34 }
 0x205   :  { %v871_v45 = vsel %vm870_vm15, %v1222_v13, %v867_v42  ;;  %1229 = vpow2.f32 %v1140_v43  ;;  %v560_v13 = vsel %vm466_vm2, %v1525_v36, 0.0  ;;  %v638_v43 = vpop.permute.xlu1 %637 }
 0x206   :  { %v1226_v48 = vpop.eup %1225  ;;  %v876_v49 = vsel %vm873_vm0, %v875_v63, %v871_v45  ;;  %v561_v45 = vsel %vm466_vm2, %v1537_v39, 0.0 }
 0x207   :  { %v1228_v50 = vpop.eup %1227  ;;  %v991_v51 = vsel %vm1576_vm7, %v876_v49, %v1641_v20  ;;  %v879_v1 = vmul.f32 %v1226_v48, %v736_v28  ;;  %vm884_vm1 = vweird.f32 %v1226_v48  ;;  %v630_v20 = vpop.permute.xlu2 %629 }
 0x208   :  { %1007 = vst [vmem:[#allocation2 + $0x40] sm:$0xff] %v991_v51  ;;  %v737_v52 = vadd.f32 1.0, %v1228_v50  ;;  %vm885_vm5 = vmor %vm883_vm4, %vm884_vm1  ;;  %v656_v21 = vsel %vm579_vm3, %v630_v20, 0.0 }
 0x209   :  { %v880_v33 = vsub.f32 1.0, %v879_v1 }
 0x20a   :  { %1231 = vrcp.f32 %v737_v52  ;;  %v438_v54 = vpop.f32.mrf.mxu3  ;;  %v902_v19 = vand.u32 2147483647, %v737_v52  ;;  %v904_v14 = vand.u32 2147483648, %v737_v52  ;;  %vm898_vm9 = vweird.f32 %v737_v52 }
 0x20b   :  { %v1230_v11 = vpop.eup %1229  ;;  %v881_v57 = vmul.f32 %v1226_v48, %v880_v33  ;;  %v439_v59 = vadd.f32 %v1535_v26, %v438_v54 }
 0x20c   :  { %v738_v61 = vadd.f32 1.0, %v1230_v11  ;;  %vm903_vm11 = vcmp.eq.f32.partialorder %v902_v19, 8.507059e+37  ;;  %v905_v28 = vor.u32 1.1754944e-38, %v904_v14 }
 0x20d   :  { %v882_v62 = vadd.f32 %v1226_v48, %v881_v57  ;;  %v575_v0 = vadd.f32 %v559_v60, %v439_v59  ;;  %v562_v60 = vsel %vm466_vm2, %v1547_v47, 0.0 }
 0x20e   :  { %1233 = vrcp.f32 %v738_v61  ;;  %v917_v29 = vand.u32 2147483647, %v738_v61  ;;  %v919_v30 = vand.u32 2147483648, %v738_v61  ;;  %vm913_vm13 = vweird.f32 %v738_v61 }
 0x20f   :  { %v886_v17 = vsel %vm885_vm5, %v1226_v48, %v882_v62  ;;  %v1700_v3 = vadd.f32 %v656_v21, %v575_v0  ;;  %v642_v57 = vpop.permute.xlu2 %641 }
 0x210   :  { %v1232_v4 = vpop.eup %1231  ;;  %v891_v5 = vsel %vm888_vm6, %v890_v2, %v886_v17  ;;  %v920_v48 = vor.u32 1.1754944e-38, %v919_v30  ;;  %vm918_vm15 = vcmp.eq.f32.partialorder %v917_v29, 8.507059e+37  ;;  %v659_v62 = vsel %vm579_vm3, %v642_v57, 0.0 }
 0x211   :  { %v992_v38 = vsel %vm1576_vm7, %v891_v5, %v1660_v46  ;;  %v894_v6 = vmul.f32 %v1232_v4, %v737_v52  ;;  %v1141_v7 = vmul.f32 -1.442695, %v1700_v3  ;;  %vm899_vm8 = vweird.f32 %v1232_v4 }
 0x212   :  { %1008 = vst [vmem:[#allocation2 + $0x48] sm:$0xff] %v992_v38  ;;  %v440_v18 = vpop.f32.mrf.mxu3  ;;  %vm900_vm10 = vmor %vm898_vm9, %vm899_vm8 }
 0x213   :  { %v895_v8 = vsub.f32 1.0, %v894_v6  ;;  %1235 = vpow2.f32 %v1141_v7  ;;  %v441_v10 = vadd.f32 %v1535_v26, %v440_v18 }
 0x214   :  { %v1234_v44 = vpop.eup %1233 }
 0x215   :  { %v896_v55 = vmul.f32 %v1232_v4, %v895_v8  ;;  %v909_v46 = vmul.f32 %v1234_v44, %v738_v61  ;;  %v576_v16 = vadd.f32 %v560_v13, %v441_v10  ;;  %vm914_vm12 = vweird.f32 %v1234_v44 }
 0x216   :  { %vm915_vm14 = vmor %vm913_vm13, %vm914_vm12 }
 0x217   :  { %v897_v12 = vadd.f32 %v1232_v4, %v896_v55  ;;  %v910_v24 = vsub.f32 1.0, %v909_v46  ;;  %v1712_v25 = vadd.f32 %v657_v15, %v576_v16 }
 0x219   :  { %v1236_v36 = vpop.eup %1235  ;;  %v901_v31 = vsel %vm900_vm10, %v1232_v4, %v897_v12  ;;  %v911_v32 = vmul.f32 %v1234_v44, %v910_v24  ;;  %v1142_v23 = vmul.f32 -1.442695, %v1712_v25 }
 0x21a   :  { %v906_v35 = vsel %vm903_vm11, %v905_v28, %v901_v31  ;;  %v739_v40 = vadd.f32 1.0, %v1236_v36  ;;  %v443_v56 = vpop.f32.mrf.mxu3 }
 0x21b   :  { %v993_v41 = vsel %vm1576_vm7, %v906_v35, %v1676_v27  ;;  %v912_v42 = vadd.f32 %v1234_v44, %v911_v32  ;;  %1237 = vpow2.f32 %v1142_v23  ;;  %v444_v63 = vadd.f32 %v1535_v26, %v443_v56 }
 0x21c   :  { %1009 = vst [vmem:[#allocation2 + $0x50] sm:$0xff] %v993_v41  ;;  %1239 = vrcp.f32 %v739_v40  ;;  %v658_v27 = vsel %vm579_vm3, %v638_v43, 0.0  ;;  %v934_v20 = vand.u32 2147483648, %v739_v40  ;;  %v932_v2 = vand.u32 2147483647, %v739_v40 }
 0x21d   :  { %v916_v49 = vsel %vm915_vm14, %v1234_v44, %v912_v42  ;;  %v577_v50 = vadd.f32 %v561_v45, %v444_v63  ;;  %vm928_vm1 = vweird.f32 %v739_v40 }
 0x21e   :  { %v921_v51 = vsel %vm918_vm15, %v920_v48, %v916_v49  ;;  %v935_v47 = vor.u32 1.1754944e-38, %v934_v20  ;;  %vm933_vm2 = vcmp.eq.f32.partialorder %v932_v2, 8.507059e+37 }
 0x21f   :  { %v994_v1 = vsel %vm1576_vm7, %v921_v51, %v1688_v34  ;;  %v1727_v52 = vadd.f32 %v658_v27, %v577_v50 }
 0x220   :  { %1010 = vst [vmem:[#allocation2 + $0x58] sm:$0xff] %v994_v1 }
 0x221   :  { %v1238_v33 = vpop.eup %1237  ;;  %v1143_v39 = vmul.f32 -1.442695, %v1727_v52 }
 0x222   :  { %v1240_v53 = vpop.eup %1239  ;;  %v740_v54 = vadd.f32 1.0, %v1238_v33  ;;  %v445_v11 = vpop.f32.mrf.mxu3 }
 0x223   :  { %v924_v58 = vmul.f32 %v1240_v53, %v739_v40  ;;  %1241 = vpow2.f32 %v1143_v39  ;;  %v446_v59 = vadd.f32 %v1535_v26, %v445_v11  ;;  %vm929_vm0 = vweird.f32 %v1240_v53 }
 0x224   :  { %1243 = vrcp.f32 %v740_v54  ;;  %vm930_vm4 = vmor %vm928_vm1, %vm929_vm0  ;;  %v949_v9 = vand.u32 2147483648, %v740_v54  ;;  %v947_v44 = vand.u32 2147483647, %v740_v54  ;;  %vm943_vm5 = vweird.f32 %v740_v54 }
 0x225   :  { %v925_v34 = vsub.f32 1.0, %v924_v58  ;;  %v578_v61 = vadd.f32 %v562_v60, %v446_v59 }
 0x226   :  { %v950_v55 = vor.u32 1.1754944e-38, %v949_v9  ;;  %vm948_vm8 = vcmp.eq.f32.partialorder %v947_v44, 8.507059e+37 }
 0x227   :  { %v926_v0 = vmul.f32 %v1240_v53, %v925_v34  ;;  %v1736_v21 = vadd.f32 %v659_v62, %v578_v61 }
 0x229   :  { %v1242_v17 = vpop.eup %1241  ;;  %v927_v4 = vadd.f32 %v1240_v53, %v926_v0  ;;  %v1144_v26 = vmul.f32 -1.442695, %v1736_v21 }
 0x22a   :  { %v1244_v5 = vpop.eup %1243  ;;  %v741_v38 = vadd.f32 1.0, %v1242_v17 }
 0x22b   :  { %v931_v6 = vsel %vm930_vm4, %v1240_v53, %v927_v4  ;;  %v939_v7 = vmul.f32 %v1244_v5, %v740_v54  ;;  %1245 = vpow2.f32 %v1144_v26  ;;  %vm944_vm3 = vweird.f32 %v1244_v5 }
 0x22c   :  { %v936_v37 = vsel %vm933_vm2, %v935_v47, %v931_v6  ;;  %1247 = vrcp.f32 %v741_v38  ;;  %vm945_vm6 = vmor %vm943_vm5, %vm944_vm3  ;;  %v964_v28 = vand.u32 2147483648, %v741_v38  ;;  %v962_v30 = vand.u32 2147483647, %v741_v38 }
 0x22d   :  { %v995_v18 = vsel %vm1576_vm7, %v936_v37, %v1700_v3  ;;  %v940_v8 = vsub.f32 1.0, %v939_v7  ;;  %vm958_vm10 = vweird.f32 %v741_v38 }
 0x22e   :  { %1011 = vst [vmem:[#allocation2 + $0x60] sm:$0xff] %v995_v18  ;;  %v965_v32 = vor.u32 1.1754944e-38, %v964_v28  ;;  %vm963_vm12 = vcmp.eq.f32.partialorder %v962_v30, 8.507059e+37 }
 0x22f   :  { %v941_v10 = vmul.f32 %v1244_v5, %v940_v8 }
 0x231   :  { %v1246_v13 = vpop.eup %1245  ;;  %v942_v19 = vadd.f32 %v1244_v5, %v941_v10 }
 0x232   :  { %v1248_v14 = vpop.eup %1247  ;;  %v742_v46 = vadd.f32 1.0, %v1246_v13 }
 0x233   :  { %v946_v16 = vsel %vm945_vm6, %v1244_v5, %v942_v19  ;;  %v954_v15 = vmul.f32 %v1248_v14, %v741_v38  ;;  %vm959_vm9 = vweird.f32 %v1248_v14 }
 0x234   :  { %v951_v12 = vsel %vm948_vm8, %v950_v55, %v946_v16  ;;  %1249 = vrcp.f32 %v742_v46  ;;  %vm960_vm11 = vmor %vm958_vm10, %vm959_vm9  ;;  %v979_v41 = vand.u32 2147483648, %v742_v46  ;;  %v977_v43 = vand.u32 2147483647, %v742_v46 }
 0x235   :  { %v996_v3 = vsel %vm1576_vm7, %v951_v12, %v1712_v25  ;;  %v955_v24 = vsub.f32 1.0, %v954_v15  ;;  %vm973_vm14 = vweird.f32 %v742_v46 }
 0x236   :  { %1012 = vst [vmem:[#allocation2 + $0x68] sm:$0xff] %v996_v3  ;;  %v980_v45 = vor.u32 1.1754944e-38, %v979_v41  ;;  %vm978_vm0 = vcmp.eq.f32.partialorder %v977_v43, 8.507059e+37 }
 0x237   :  { %v956_v29 = vmul.f32 %v1248_v14, %v955_v24 }
 0x239   :  { %v957_v36 = vadd.f32 %v1248_v14, %v956_v29 }
 0x23a   :  { %v1250_v31 = vpop.eup %1249 }
 0x23b   :  { %v961_v23 = vsel %vm960_vm11, %v1248_v14, %v957_v36  ;;  %v969_v35 = vmul.f32 %v1250_v31, %v742_v46  ;;  %vm974_vm13 = vweird.f32 %v1250_v31 }
 0x23c   :  { %v966_v40 = vsel %vm963_vm12, %v965_v32, %v961_v23  ;;  %vm975_vm15 = vmor %vm973_vm14, %vm974_vm13 }
 0x23d   :  { %v997_v56 = vsel %vm1576_vm7, %v966_v40, %v1727_v52  ;;  %v970_v25 = vsub.f32 1.0, %v969_v35 }
 0x23e   :  { %1013 = vst [vmem:[#allocation2 + $0x70] sm:$0xff] %v997_v56 }
 0x23f   :  { %v971_v42 = vmul.f32 %v1250_v31, %v970_v25 }
 0x241   :  { %v972_v63 = vadd.f32 %v1250_v31, %v971_v42 }
 0x243   :  { %v976_v48 = vsel %vm975_vm15, %v1250_v31, %v972_v63 }
 0x244   :  { %v981_v49 = vsel %vm978_vm0, %v980_v45, %v976_v48 }
 0x245   :  { %v998_v50 = vsel %vm1576_vm7, %v981_v49, %v1736_v21 }
 0x246   :  { %1014 = vst [vmem:[#allocation2 + $0x78] sm:$0xff] %v998_v50 }
 0x247   :  { %1027 = dma.vmem_to_hbm [thread:$0]  %s1020_s23, 2048, %s1022_s26, [#allocation3], %s1280_s27, %s1280_s27, %s1281_s28  }
 0x248   :  { %1275 = dma.done.wait [#allocation3], 2048  }
 0x249   :  { %1276 = vsyncadd [#allocation3], 4294965248 }
 0x24a   :  { %1032 = vsyncpa [#allocation3], 1 }

</bundles_post_ra>
